<compile_context>
chip_gen: v7x
topology: tpu7x:2x2x1
jax: 0.10.0
libtpu: 0.0.40
codegen_flags: <defaults>
</compile_context>

<pallas_src>
import numpy as np
import jax
import jax.numpy as jnp
from jax.experimental import pallas as pl
from jax.experimental.pallas import tpu as pltpu

# ---------------- small synthetic BERT config ----------------
VOCAB = 50
MAX_POS = 16
TYPE_VOCAB = 2
HIDDEN = 32
NUM_HEADS = 2
HEAD_DIM = HIDDEN // NUM_HEADS
INTERMEDIATE = 64
NUM_LAYERS = 2
LN_EPS = 1e-12


def _layer_norm(x, gamma, beta):
    mu = jnp.mean(x, axis=-1, keepdims=True)
    var = jnp.mean(jnp.square(x - mu), axis=-1, keepdims=True)
    return (x - mu) * jax.lax.rsqrt(var + LN_EPS) * gamma + beta


def _gelu(x):
    # TODO(synk): HF BERT default is exact erf-GELU; tanh approximation used (EUP-friendly).
    c = jnp.float32(0.7978845608028654)  # sqrt(2/pi)
    return 0.5 * x * (1.0 + jnp.tanh(c * (x + 0.044715 * x * x * x)))


# ---------------- fused Pallas kernel: one grid step == one layer ----------------
def encoder_kernel(we_ref, pe_ref, te_ref, eg_ref, eb_ref, mask_ref,
                   wq_ref, bq_ref, wk_ref, bk_ref, wv_ref, bv_ref,
                   wo_ref, bo_ref, g1_ref, b1_ref,
                   wi_ref, bi_ref, wd_ref, bd_ref, g2_ref, b2_ref,
                   h_ref):
    # Layer 0: seed the resident hidden state with embeddings + LayerNorm.
    @pl.when(pl.program_id(0) == 0)
    def _():
        x0 = we_ref[...] + pe_ref[...][None] + te_ref[...][None]
        h_ref[...] = _layer_norm(x0, eg_ref[...], eb_ref[...])

    x = h_ref[...]              # (B, S, H) f32 — resident in VMEM across layers
    add_mask = mask_ref[...]    # (B, 1, S) additive key mask (0 / -1e9), hoisted

    B, S, _ = x.shape

    def dense(inp, w_ref, b_ref):
        y = jnp.dot(inp.reshape(B * S, inp.shape[-1]), w_ref[...],
                    preferred_element_type=jnp.float32)
        return y.reshape(B, S, -1) + b_ref[...][None]

    # TODO(synk): for real BERT configs cast matmul inputs to bf16 (keep f32 accum)
    # and pad/repack the lane dim toward 128; LN/GELU/softmax math stays f32.
    q = dense(x, wq_ref, bq_ref)
    k = dense(x, wk_ref, bk_ref)
    v = dense(x, wv_ref, bv_ref)

    scale = jnp.float32(1.0 / np.sqrt(HEAD_DIM))
    ctx_heads = []
    for hd in range(NUM_HEADS):
        lo = hd * HEAD_DIM
        qh = q[:, :, lo:lo + HEAD_DIM]
        kh = k[:, :, lo:lo + HEAD_DIM]
        vh = v[:, :, lo:lo + HEAD_DIM]
        # Minimal HEAD_DIM-wide contraction (no masked full-H matmuls).
        s = jnp.einsum('bqd,bkd->bqk', qh, kh,
                       preferred_element_type=jnp.float32) * scale
        s = s + add_mask
        s = s - jnp.max(s, axis=-1, keepdims=True)
        p = jnp.exp(s)
        p = p * pl.reciprocal(jnp.sum(p, axis=-1, keepdims=True), approx=True)
        ctx_heads.append(jnp.einsum('bqk,bkd->bqd', p, vh,
                                    preferred_element_type=jnp.float32))
    # TODO(synk): for large S switch this block to an online-softmax (flash)
    # formulation with a KV-block grid axis instead of full (B,S,S) scores.
    ctx = jnp.concatenate(ctx_heads, axis=-1)

    attn_out = dense(ctx, wo_ref, bo_ref)
    h1 = _layer_norm(x + attn_out, g1_ref[...], b1_ref[...])
    inter = _gelu(dense(h1, wi_ref, bi_ref))
    ffn = dense(inter, wd_ref, bd_ref)
    h_ref[...] = _layer_norm(h1 + ffn, g2_ref[...], b2_ref[...])


# ---------------- pallas_call wrapper ----------------
@jax.jit
def bert_encoder_forward(input_ids, attention_mask, params):
    """Returns (last_hidden_state (B,S,H), cls_output (B,H))."""
    B, S = input_ids.shape
    # Glue: data-dependent embedding gather done in plain JAX.
    we = jnp.take(params['word_emb'], input_ids, axis=0)        # (B,S,H)
    pe = params['pos_emb'][:S]                                   # (S,H)
    te = params['type_emb'][0:1]                                 # token_type_ids = 0
    # Additive attention mask computed once, outside the layer loop.
    add_mask = ((1.0 - attention_mask.astype(jnp.float32))
                * jnp.float32(-1e9))[:, None, :]                 # (B,1,S)

    full3 = lambda shp: pl.BlockSpec(shp, lambda l: (0, 0, 0))
    full2 = lambda shp: pl.BlockSpec(shp, lambda l: (0, 0))
    per_layer = lambda shp: pl.BlockSpec((None,) + shp, lambda l: (l, 0, 0))

    in_specs = [
        full3((B, S, HIDDEN)),               # gathered word embeddings
        full2((S, HIDDEN)),                  # position embeddings
        full2((1, HIDDEN)),                  # token-type embedding (type 0)
        full2((1, HIDDEN)),                  # embedding LN gamma
        full2((1, HIDDEN)),                  # embedding LN beta
        full3((B, 1, S)),                    # additive attention mask
        per_layer((HIDDEN, HIDDEN)),         # wq
        per_layer((1, HIDDEN)),              # bq
        per_layer((HIDDEN, HIDDEN)),         # wk
        per_layer((1, HIDDEN)),              # bk
        per_layer((HIDDEN, HIDDEN)),         # wv
        per_layer((1, HIDDEN)),              # bv
        per_layer((HIDDEN, HIDDEN)),         # wo
        per_layer((1, HIDDEN)),              # bo
        per_layer((1, HIDDEN)),              # LN1 gamma
        per_layer((1, HIDDEN)),              # LN1 beta
        per_layer((HIDDEN, INTERMEDIATE)),   # wi
        per_layer((1, INTERMEDIATE)),        # bi
        per_layer((INTERMEDIATE, HIDDEN)),   # wd
        per_layer((1, HIDDEN)),              # bd
        per_layer((1, HIDDEN)),              # LN2 gamma
        per_layer((1, HIDDEN)),              # LN2 beta
    ]

    # TODO(synk): for real BERT sizes (H=768, I=3072, S>=128) add seq/FFN tiling
    # grid axes + vmem_limit_bytes headroom (v7x has only 64 MiB VMEM) and mark
    # batch/seq axes "parallel" to use both v7x TensorCores.
    h = pl.pallas_call(
        encoder_kernel,
        out_shape=jax.ShapeDtypeStruct((B, S, HIDDEN), jnp.float32),
        grid=(NUM_LAYERS,),
        in_specs=in_specs,
        out_specs=pl.BlockSpec((B, S, HIDDEN), lambda l: (0, 0, 0)),
        compiler_params=pltpu.CompilerParams(
            dimension_semantics=("arbitrary",)),
    )(we, pe, te, params['emb_ln_g'], params['emb_ln_b'], add_mask,
      params['wq'], params['bq'], params['wk'], params['bk'],
      params['wv'], params['bv'], params['wo'], params['bo'],
      params['ln1_g'], params['ln1_b'],
      params['wi'], params['bi'], params['wd'], params['bd'],
      params['ln2_g'], params['ln2_b'])

    return h, h[:, 0, :]


# ---------------- deterministic synthetic parameters (layer-stacked) ----------------
def init_params(key):
    kit = iter(jax.random.split(key, 32))

    def w(shape):
        return 0.02 * jax.random.normal(next(kit), shape, jnp.float32)

    def zeros(shape):
        return jnp.zeros(shape, jnp.float32)

    def ones(shape):
        return jnp.ones(shape, jnp.float32)

    L, H, I = NUM_LAYERS, HIDDEN, INTERMEDIATE
    return {
        'word_emb': w((VOCAB, H)),
        'pos_emb': w((MAX_POS, H)),
        'type_emb': w((TYPE_VOCAB, H)),
        'emb_ln_g': ones((1, H)),
        'emb_ln_b': zeros((1, H)),
        # layer-stacked weights: leading axis = layer, consumed by the grid index_map
        'wq': w((L, H, H)), 'bq': w((L, 1, H)),
        'wk': w((L, H, H)), 'bk': w((L, 1, H)),
        'wv': w((L, H, H)), 'bv': w((L, 1, H)),
        'wo': w((L, H, H)), 'bo': w((L, 1, H)),
        'ln1_g': ones((L, 1, H)), 'ln1_b': w((L, 1, H)),
        'wi': w((L, H, I)), 'bi': w((L, 1, I)),
        'wd': w((L, I, H)), 'bd': w((L, 1, H)),
        'ln2_g': ones((L, 1, H)), 'ln2_b': w((L, 1, H)),
    }


# ---------------- pure-JAX reference for self-check ----------------
def reference_forward(input_ids, attention_mask, params):
    B, S = input_ids.shape
    x = (params['word_emb'][input_ids]
         + params['pos_emb'][:S][None]
         + params['type_emb'][0][None, None])
    x = _layer_norm(x, params['emb_ln_g'], params['emb_ln_b'])
    add_mask = (1.0 - attention_mask.astype(jnp.float32)) * jnp.float32(-1e9)
    for l in range(NUM_LAYERS):
        q = (x @ params['wq'][l] + params['bq'][l]).reshape(
            B, S, NUM_HEADS, HEAD_DIM).transpose(0, 2, 1, 3)
        k = (x @ params['wk'][l] + params['bk'][l]).reshape(
            B, S, NUM_HEADS, HEAD_DIM).transpose(0, 2, 1, 3)
        v = (x @ params['wv'][l] + params['bv'][l]).reshape(
            B, S, NUM_HEADS, HEAD_DIM).transpose(0, 2, 1, 3)
        s = jnp.einsum('bhqd,bhkd->bhqk', q, k) / np.sqrt(HEAD_DIM)
        s = s + add_mask[:, None, None, :]
        p = jax.nn.softmax(s, axis=-1)
        ctx = jnp.einsum('bhqk,bhkd->bhqd', p, v).transpose(
            0, 2, 1, 3).reshape(B, S, HIDDEN)
        attn = ctx @ params['wo'][l] + params['bo'][l]
        h1 = _layer_norm(x + attn, params['ln1_g'][l], params['ln1_b'][l])
        inter = _gelu(h1 @ params['wi'][l] + params['bi'][l])
        x = _layer_norm(h1 + (inter @ params['wd'][l] + params['bd'][l]),
                        params['ln2_g'][l], params['ln2_b'][l])
    return x, x[:, 0, :]


if __name__ == "__main__":
    key = jax.random.PRNGKey(0)
    pkey, ikey = jax.random.split(key)
    params = init_params(pkey)

    B, S = 2, 8
    input_ids = jax.random.randint(ikey, (B, S), 0, VOCAB, dtype=jnp.int32)
    attention_mask = jnp.array([[1, 1, 1, 1, 1, 1, 1, 1],
                                [1, 1, 1, 1, 1, 0, 0, 0]], dtype=jnp.int32)

    last_hidden, cls_out = bert_encoder_forward(input_ids, attention_mask, params)
    jax.block_until_ready((last_hidden, cls_out))

    ref_h, ref_c = reference_forward(input_ids, attention_mask, params)
    assert last_hidden.shape == (B, S, HIDDEN) and cls_out.shape == (B, HIDDEN)
    max_err = float(np.max(np.abs(np.asarray(last_hidden) - np.asarray(ref_h))))
    assert np.allclose(np.asarray(last_hidden), np.asarray(ref_h),
                       atol=2e-3, rtol=2e-3), max_err
    assert np.allclose(np.asarray(cls_out), np.asarray(ref_c),
                       atol=2e-3, rtol=2e-3)
    print("KERNEL_OK")
</pallas_src>

<mosaic_0001>
module attributes {stable_mosaic.version = 11 : i64} {
  func.func @encoder_kernel(%arg0: i32, %arg1: memref<2x8x32xf32, #tpu.memory_space<vmem>>, %arg2: memref<8x32xf32, #tpu.memory_space<vmem>>, %arg3: memref<1x32xf32, #tpu.memory_space<vmem>>, %arg4: memref<1x32xf32, #tpu.memory_space<vmem>>, %arg5: memref<1x32xf32, #tpu.memory_space<vmem>>, %arg6: memref<2x1x8xf32, #tpu.memory_space<vmem>>, %arg7: memref<1x32x32xf32, #tpu.memory_space<vmem>>, %arg8: memref<1x1x32xf32, #tpu.memory_space<vmem>>, %arg9: memref<1x32x32xf32, #tpu.memory_space<vmem>>, %arg10: memref<1x1x32xf32, #tpu.memory_space<vmem>>, %arg11: memref<1x32x32xf32, #tpu.memory_space<vmem>>, %arg12: memref<1x1x32xf32, #tpu.memory_space<vmem>>, %arg13: memref<1x32x32xf32, #tpu.memory_space<vmem>>, %arg14: memref<1x1x32xf32, #tpu.memory_space<vmem>>, %arg15: memref<1x1x32xf32, #tpu.memory_space<vmem>>, %arg16: memref<1x1x32xf32, #tpu.memory_space<vmem>>, %arg17: memref<1x32x64xf32, #tpu.memory_space<vmem>>, %arg18: memref<1x1x64xf32, #tpu.memory_space<vmem>>, %arg19: memref<1x64x32xf32, #tpu.memory_space<vmem>>, %arg20: memref<1x1x32xf32, #tpu.memory_space<vmem>>, %arg21: memref<1x1x32xf32, #tpu.memory_space<vmem>>, %arg22: memref<1x1x32xf32, #tpu.memory_space<vmem>>, %arg23: memref<2x8x32xf32, #tpu.memory_space<vmem>>) attributes {dimension_semantics = [#tpu.dimension_semantics<arbitrary>], iteration_bounds = array<i64: 2>, scalar_prefetch = 0 : i64, scratch_operands = 0 : i64, tpu.core_type = #tpu.core_type<tc>, window_params = [{pipeline_mode = #tpu.pipeline_mode<synchronous>, transform_indices = @transform_0, window_bounds = array<i64: 2, 8, 32>}, {pipeline_mode = #tpu.pipeline_mode<synchronous>, transform_indices = @transform_1, window_bounds = array<i64: 8, 32>}, {pipeline_mode = #tpu.pipeline_mode<synchronous>, transform_indices = @transform_2, window_bounds = array<i64: 1, 32>}, {pipeline_mode = #tpu.pipeline_mode<synchronous>, transform_indices = @transform_3, window_bounds = array<i64: 1, 32>}, {pipeline_mode = #tpu.pipeline_mode<synchronous>, transform_indices = @transform_4, window_bounds = array<i64: 1, 32>}, {pipeline_mode = #tpu.pipeline_mode<synchronous>, transform_indices = @transform_5, window_bounds = array<i64: 2, 1, 8>}, {transform_indices = @transform_6, window_bounds = array<i64: 1, 32, 32>}, {transform_indices = @transform_7, window_bounds = array<i64: 1, 1, 32>}, {transform_indices = @transform_8, window_bounds = array<i64: 1, 32, 32>}, {transform_indices = @transform_9, window_bounds = array<i64: 1, 1, 32>}, {transform_indices = @transform_10, window_bounds = array<i64: 1, 32, 32>}, {transform_indices = @transform_11, window_bounds = array<i64: 1, 1, 32>}, {transform_indices = @transform_12, window_bounds = array<i64: 1, 32, 32>}, {transform_indices = @transform_13, window_bounds = array<i64: 1, 1, 32>}, {transform_indices = @transform_14, window_bounds = array<i64: 1, 1, 32>}, {transform_indices = @transform_15, window_bounds = array<i64: 1, 1, 32>}, {transform_indices = @transform_16, window_bounds = array<i64: 1, 32, 64>}, {transform_indices = @transform_17, window_bounds = array<i64: 1, 1, 64>}, {transform_indices = @transform_18, window_bounds = array<i64: 1, 64, 32>}, {transform_indices = @transform_19, window_bounds = array<i64: 1, 1, 32>}, {transform_indices = @transform_20, window_bounds = array<i64: 1, 1, 32>}, {transform_indices = @transform_21, window_bounds = array<i64: 1, 1, 32>}, {pipeline_mode = #tpu.pipeline_mode<synchronous>, transform_indices = @transform_22, window_bounds = array<i64: 2, 8, 32>}]} {
    %c0_i32 = arith.constant 0 : i32
    %0 = arith.cmpi eq, %arg0, %c0_i32 : i32
    %1 = arith.extui %0 : i1 to i32
    %c0_i32_0 = arith.constant 0 : i32
    %2 = arith.cmpi ne, %1, %c0_i32_0 : i32
    scf.if %2 {
      %c0_86 = arith.constant 0 : index
      %c0_87 = arith.constant 0 : index
      %c0_88 = arith.constant 0 : index
      %176 = vector.load %arg1[%c0_86, %c0_87, %c0_88] : memref<2x8x32xf32, #tpu.memory_space<vmem>>, vector<2x8x32xf32>
      %c0_89 = arith.constant 0 : index
      %c0_90 = arith.constant 0 : index
      %177 = vector.load %arg2[%c0_89, %c0_90] : memref<8x32xf32, #tpu.memory_space<vmem>>, vector<8x32xf32>
      %178 = vector.shape_cast %177 : vector<8x32xf32> to vector<1x8x32xf32>
      %179 = vector.broadcast %178 : vector<1x8x32xf32> to vector<2x8x32xf32>
      %180 = arith.addf %176, %179 : vector<2x8x32xf32>
      %c0_91 = arith.constant 0 : index
      %c0_92 = arith.constant 0 : index
      %181 = vector.load %arg3[%c0_91, %c0_92] : memref<1x32xf32, #tpu.memory_space<vmem>>, vector<1x32xf32>
      %182 = vector.shape_cast %181 : vector<1x32xf32> to vector<1x1x32xf32>
      %183 = vector.broadcast %182 : vector<1x1x32xf32> to vector<2x8x32xf32>
      %184 = arith.addf %180, %183 : vector<2x8x32xf32>
      %c0_93 = arith.constant 0 : index
      %c0_94 = arith.constant 0 : index
      %185 = vector.load %arg4[%c0_93, %c0_94] : memref<1x32xf32, #tpu.memory_space<vmem>>, vector<1x32xf32>
      %c0_95 = arith.constant 0 : index
      %c0_96 = arith.constant 0 : index
      %186 = vector.load %arg5[%c0_95, %c0_96] : memref<1x32xf32, #tpu.memory_space<vmem>>, vector<1x32xf32>
      %cst_97 = arith.constant dense<0.000000e+00> : vector<2x8xf32>
      %187 = vector.multi_reduction <add>, %184, %cst_97 [2] : vector<2x8x32xf32> to vector<2x8xf32>
      %188 = vector.shape_cast %187 : vector<2x8xf32> to vector<2x8x1xf32>
      %cst_98 = arith.constant 3.200000e+01 : f32
      %189 = vector.broadcast %cst_98 : f32 to vector<2x8x1xf32>
      %190 = arith.divf %188, %189 : vector<2x8x1xf32>
      %191 = vector.broadcast %190 : vector<2x8x1xf32> to vector<2x8x32xf32>
      %192 = arith.subf %184, %191 : vector<2x8x32xf32>
      %193 = arith.mulf %192, %192 : vector<2x8x32xf32>
      %cst_99 = arith.constant dense<0.000000e+00> : vector<2x8xf32>
      %194 = vector.multi_reduction <add>, %193, %cst_99 [2] : vector<2x8x32xf32> to vector<2x8xf32>
      %195 = vector.shape_cast %194 : vector<2x8xf32> to vector<2x8x1xf32>
      %cst_100 = arith.constant 3.200000e+01 : f32
      %196 = vector.broadcast %cst_100 : f32 to vector<2x8x1xf32>
      %197 = arith.divf %195, %196 : vector<2x8x1xf32>
      %198 = vector.broadcast %190 : vector<2x8x1xf32> to vector<2x8x32xf32>
      %199 = arith.subf %184, %198 : vector<2x8x32xf32>
      %cst_101 = arith.constant 9.99999996E-13 : f32
      %200 = vector.broadcast %cst_101 : f32 to vector<2x8x1xf32>
      %201 = arith.addf %197, %200 : vector<2x8x1xf32>
      %202 = math.rsqrt %201 : vector<2x8x1xf32>
      %203 = vector.broadcast %202 : vector<2x8x1xf32> to vector<2x8x32xf32>
      %204 = arith.mulf %199, %203 : vector<2x8x32xf32>
      %205 = vector.shape_cast %185 : vector<1x32xf32> to vector<1x1x32xf32>
      %206 = vector.broadcast %205 : vector<1x1x32xf32> to vector<2x8x32xf32>
      %207 = arith.mulf %204, %206 : vector<2x8x32xf32>
      %208 = vector.shape_cast %186 : vector<1x32xf32> to vector<1x1x32xf32>
      %209 = vector.broadcast %208 : vector<1x1x32xf32> to vector<2x8x32xf32>
      %210 = arith.addf %207, %209 : vector<2x8x32xf32>
      %c0_102 = arith.constant 0 : index
      %c0_103 = arith.constant 0 : index
      %c0_104 = arith.constant 0 : index
      %211 = vector.load %arg23[%c0_102, %c0_103, %c0_104] : memref<2x8x32xf32, #tpu.memory_space<vmem>>, vector<2x8x32xf32>
      tpu.vector_store %arg23[%c0_102, %c0_103, %c0_104], %210 {strides = array<i32>} : memref<2x8x32xf32, #tpu.memory_space<vmem>>, vector<2x8x32xf32>,
    } else {
    }
    %c0 = arith.constant 0 : index
    %c0_1 = arith.constant 0 : index
    %c0_2 = arith.constant 0 : index
    %3 = vector.load %arg23[%c0, %c0_1, %c0_2] : memref<2x8x32xf32, #tpu.memory_space<vmem>>, vector<2x8x32xf32>
    %c0_3 = arith.constant 0 : index
    %c0_4 = arith.constant 0 : index
    %c0_5 = arith.constant 0 : index
    %4 = vector.load %arg6[%c0_3, %c0_4, %c0_5] : memref<2x1x8xf32, #tpu.memory_space<vmem>>, vector<2x1x8xf32>
    %5 = vector.shape_cast %3 : vector<2x8x32xf32> to vector<16x32xf32>
    %c0_6 = arith.constant 0 : index
    %c0_7 = arith.constant 0 : index
    %c0_8 = arith.constant 0 : index
    %6 = vector.load %arg7[%c0_6, %c0_7, %c0_8] : memref<1x32x32xf32, #tpu.memory_space<vmem>>, vector<1x32x32xf32>
    %7 = vector.shape_cast %6 : vector<1x32x32xf32> to vector<32x32xf32>
    %cst = arith.constant dense<0.000000e+00> : vector<16x32xf32>
    %8 = tpu.matmul %5, %7, %cst {dimension_numbers = #tpu.dot_dimension_numbers<[1], [0], [0], [1], [0, 0, 1, 1], [], []>} : vector<16x32xf32>, vector<32x32xf32>, vector<16x32xf32> -> vector<16x32xf32>
    %9 = vector.shape_cast %8 : vector<16x32xf32> to vector<2x8x32xf32>
    %c0_9 = arith.constant 0 : index
    %c0_10 = arith.constant 0 : index
    %c0_11 = arith.constant 0 : index
    %10 = vector.load %arg8[%c0_9, %c0_10, %c0_11] : memref<1x1x32xf32, #tpu.memory_space<vmem>>, vector<1x1x32xf32>
    %11 = vector.shape_cast %10 : vector<1x1x32xf32> to vector<1x32xf32>
    %12 = vector.shape_cast %11 : vector<1x32xf32> to vector<1x1x32xf32>
    %13 = vector.broadcast %12 : vector<1x1x32xf32> to vector<2x8x32xf32>
    %14 = arith.addf %9, %13 : vector<2x8x32xf32>
    %15 = vector.shape_cast %3 : vector<2x8x32xf32> to vector<16x32xf32>
    %c0_12 = arith.constant 0 : index
    %c0_13 = arith.constant 0 : index
    %c0_14 = arith.constant 0 : index
    %16 = vector.load %arg9[%c0_12, %c0_13, %c0_14] : memref<1x32x32xf32, #tpu.memory_space<vmem>>, vector<1x32x32xf32>
    %17 = vector.shape_cast %16 : vector<1x32x32xf32> to vector<32x32xf32>
    %cst_15 = arith.constant dense<0.000000e+00> : vector<16x32xf32>
    %18 = tpu.matmul %15, %17, %cst_15 {dimension_numbers = #tpu.dot_dimension_numbers<[1], [0], [0], [1], [0, 0, 1, 1], [], []>} : vector<16x32xf32>, vector<32x32xf32>, vector<16x32xf32> -> vector<16x32xf32>
    %19 = vector.shape_cast %18 : vector<16x32xf32> to vector<2x8x32xf32>
    %c0_16 = arith.constant 0 : index
    %c0_17 = arith.constant 0 : index
    %c0_18 = arith.constant 0 : index
    %20 = vector.load %arg10[%c0_16, %c0_17, %c0_18] : memref<1x1x32xf32, #tpu.memory_space<vmem>>, vector<1x1x32xf32>
    %21 = vector.shape_cast %20 : vector<1x1x32xf32> to vector<1x32xf32>
    %22 = vector.shape_cast %21 : vector<1x32xf32> to vector<1x1x32xf32>
    %23 = vector.broadcast %22 : vector<1x1x32xf32> to vector<2x8x32xf32>
    %24 = arith.addf %19, %23 : vector<2x8x32xf32>
    %25 = vector.shape_cast %3 : vector<2x8x32xf32> to vector<16x32xf32>
    %c0_19 = arith.constant 0 : index
    %c0_20 = arith.constant 0 : index
    %c0_21 = arith.constant 0 : index
    %26 = vector.load %arg11[%c0_19, %c0_20, %c0_21] : memref<1x32x32xf32, #tpu.memory_space<vmem>>, vector<1x32x32xf32>
    %27 = vector.shape_cast %26 : vector<1x32x32xf32> to vector<32x32xf32>
    %cst_22 = arith.constant dense<0.000000e+00> : vector<16x32xf32>
    %28 = tpu.matmul %25, %27, %cst_22 {dimension_numbers = #tpu.dot_dimension_numbers<[1], [0], [0], [1], [0, 0, 1, 1], [], []>} : vector<16x32xf32>, vector<32x32xf32>, vector<16x32xf32> -> vector<16x32xf32>
    %29 = vector.shape_cast %28 : vector<16x32xf32> to vector<2x8x32xf32>
    %c0_23 = arith.constant 0 : index
    %c0_24 = arith.constant 0 : index
    %c0_25 = arith.constant 0 : index
    %30 = vector.load %arg12[%c0_23, %c0_24, %c0_25] : memref<1x1x32xf32, #tpu.memory_space<vmem>>, vector<1x1x32xf32>
    %31 = vector.shape_cast %30 : vector<1x1x32xf32> to vector<1x32xf32>
    %32 = vector.shape_cast %31 : vector<1x32xf32> to vector<1x1x32xf32>
    %33 = vector.broadcast %32 : vector<1x1x32xf32> to vector<2x8x32xf32>
    %34 = arith.addf %29, %33 : vector<2x8x32xf32>
    %35 = vector.extract_strided_slice %14 {offsets = [0, 0, 0], sizes = [2, 8, 16], strides = [1, 1, 1]} : vector<2x8x32xf32> to vector<2x8x16xf32>
    %36 = vector.extract_strided_slice %24 {offsets = [0, 0, 0], sizes = [2, 8, 16], strides = [1, 1, 1]} : vector<2x8x32xf32> to vector<2x8x16xf32>
    %37 = vector.extract_strided_slice %34 {offsets = [0, 0, 0], sizes = [2, 8, 16], strides = [1, 1, 1]} : vector<2x8x32xf32> to vector<2x8x16xf32>
    "tpu.trace_start"() <{level = 10 : i32, message = "bqd,bkd->bqk"}> : () -> ()
    %cst_26 = arith.constant dense<0.000000e+00> : vector<2x8x8xf32>
    %38 = tpu.matmul %35, %36, %cst_26 {dimension_numbers = #tpu.dot_dimension_numbers<[2], [2], [1], [1], [0, 0, 0, 1, 1, 1], [0], [0]>} : vector<2x8x16xf32>, vector<2x8x16xf32>, vector<2x8x8xf32> -> vector<2x8x8xf32>
    "tpu.trace_stop"() : () -> ()
    %cst_27 = arith.constant 2.500000e-01 : f32
    %39 = vector.broadcast %cst_27 : f32 to vector<2x8x8xf32>
    %40 = arith.mulf %38, %39 : vector<2x8x8xf32>
    %41 = vector.broadcast %4 : vector<2x1x8xf32> to vector<2x8x8xf32>
    %42 = arith.addf %40, %41 : vector<2x8x8xf32>
    %cst_28 = arith.constant dense<0xFF800000> : vector<2x8xf32>
    %43 = vector.multi_reduction <maximumf>, %42, %cst_28 [2] : vector<2x8x8xf32> to vector<2x8xf32>
    %44 = vector.shape_cast %43 : vector<2x8xf32> to vector<2x8x1xf32>
    %45 = vector.broadcast %44 : vector<2x8x1xf32> to vector<2x8x8xf32>
    %46 = arith.subf %42, %45 : vector<2x8x8xf32>
    %47 = math.exp %46 : vector<2x8x8xf32>
    %cst_29 = arith.constant dense<0.000000e+00> : vector<2x8xf32>
    %48 = vector.multi_reduction <add>, %47, %cst_29 [2] : vector<2x8x8xf32> to vector<2x8xf32>
    %49 = vector.shape_cast %48 : vector<2x8xf32> to vector<2x8x1xf32>
    %50 = tpu.reciprocal %49 {approx = true} : vector<2x8x1xf32> -> vector<2x8x1xf32>
    %51 = vector.broadcast %50 : vector<2x8x1xf32> to vector<2x8x8xf32>
    %52 = arith.mulf %47, %51 : vector<2x8x8xf32>
    "tpu.trace_start"() <{level = 10 : i32, message = "bqk,bkd->bqd"}> : () -> ()
    %cst_30 = arith.constant dense<0.000000e+00> : vector<2x8x16xf32>
    %53 = tpu.matmul %52, %37, %cst_30 {dimension_numbers = #tpu.dot_dimension_numbers<[2], [1], [1], [2], [0, 0, 0, 1, 1, 2], [0], [0]>} : vector<2x8x8xf32>, vector<2x8x16xf32>, vector<2x8x16xf32> -> vector<2x8x16xf32>
    "tpu.trace_stop"() : () -> ()
    %54 = vector.extract_strided_slice %14 {offsets = [0, 0, 16], sizes = [2, 8, 16], strides = [1, 1, 1]} : vector<2x8x32xf32> to vector<2x8x16xf32>
    %55 = vector.extract_strided_slice %24 {offsets = [0, 0, 16], sizes = [2, 8, 16], strides = [1, 1, 1]} : vector<2x8x32xf32> to vector<2x8x16xf32>
    %56 = vector.extract_strided_slice %34 {offsets = [0, 0, 16], sizes = [2, 8, 16], strides = [1, 1, 1]} : vector<2x8x32xf32> to vector<2x8x16xf32>
    "tpu.trace_start"() <{level = 10 : i32, message = "bqd,bkd->bqk"}> : () -> ()
    %cst_31 = arith.constant dense<0.000000e+00> : vector<2x8x8xf32>
    %57 = tpu.matmul %54, %55, %cst_31 {dimension_numbers = #tpu.dot_dimension_numbers<[2], [2], [1], [1], [0, 0, 0, 1, 1, 1], [0], [0]>} : vector<2x8x16xf32>, vector<2x8x16xf32>, vector<2x8x8xf32> -> vector<2x8x8xf32>
    "tpu.trace_stop"() : () -> ()
    %cst_32 = arith.constant 2.500000e-01 : f32
    %58 = vector.broadcast %cst_32 : f32 to vector<2x8x8xf32>
    %59 = arith.mulf %57, %58 : vector<2x8x8xf32>
    %60 = vector.broadcast %4 : vector<2x1x8xf32> to vector<2x8x8xf32>
    %61 = arith.addf %59, %60 : vector<2x8x8xf32>
    %cst_33 = arith.constant dense<0xFF800000> : vector<2x8xf32>
    %62 = vector.multi_reduction <maximumf>, %61, %cst_33 [2] : vector<2x8x8xf32> to vector<2x8xf32>
    %63 = vector.shape_cast %62 : vector<2x8xf32> to vector<2x8x1xf32>
    %64 = vector.broadcast %63 : vector<2x8x1xf32> to vector<2x8x8xf32>
    %65 = arith.subf %61, %64 : vector<2x8x8xf32>
    %66 = math.exp %65 : vector<2x8x8xf32>
    %cst_34 = arith.constant dense<0.000000e+00> : vector<2x8xf32>
    %67 = vector.multi_reduction <add>, %66, %cst_34 [2] : vector<2x8x8xf32> to vector<2x8xf32>
    %68 = vector.shape_cast %67 : vector<2x8xf32> to vector<2x8x1xf32>
    %69 = tpu.reciprocal %68 {approx = true} : vector<2x8x1xf32> -> vector<2x8x1xf32>
    %70 = vector.broadcast %69 : vector<2x8x1xf32> to vector<2x8x8xf32>
    %71 = arith.mulf %66, %70 : vector<2x8x8xf32>
    "tpu.trace_start"() <{level = 10 : i32, message = "bqk,bkd->bqd"}> : () -> ()
    %cst_35 = arith.constant dense<0.000000e+00> : vector<2x8x16xf32>
    %72 = tpu.matmul %71, %56, %cst_35 {dimension_numbers = #tpu.dot_dimension_numbers<[2], [1], [1], [2], [0, 0, 0, 1, 1, 2], [0], [0]>} : vector<2x8x8xf32>, vector<2x8x16xf32>, vector<2x8x16xf32> -> vector<2x8x16xf32>
    "tpu.trace_stop"() : () -> ()
    %73 = tpu.concatenate %53, %72 in 2 : vector<2x8x16xf32>, vector<2x8x16xf32> -> vector<2x8x32xf32>
    %74 = vector.shape_cast %73 : vector<2x8x32xf32> to vector<16x32xf32>
    %c0_36 = arith.constant 0 : index
    %c0_37 = arith.constant 0 : index
    %c0_38 = arith.constant 0 : index
    %75 = vector.load %arg13[%c0_36, %c0_37, %c0_38] : memref<1x32x32xf32, #tpu.memory_space<vmem>>, vector<1x32x32xf32>
    %76 = vector.shape_cast %75 : vector<1x32x32xf32> to vector<32x32xf32>
    %cst_39 = arith.constant dense<0.000000e+00> : vector<16x32xf32>
    %77 = tpu.matmul %74, %76, %cst_39 {dimension_numbers = #tpu.dot_dimension_numbers<[1], [0], [0], [1], [0, 0, 1, 1], [], []>} : vector<16x32xf32>, vector<32x32xf32>, vector<16x32xf32> -> vector<16x32xf32>
    %78 = vector.shape_cast %77 : vector<16x32xf32> to vector<2x8x32xf32>
    %c0_40 = arith.constant 0 : index
    %c0_41 = arith.constant 0 : index
    %c0_42 = arith.constant 0 : index
    %79 = vector.load %arg14[%c0_40, %c0_41, %c0_42] : memref<1x1x32xf32, #tpu.memory_space<vmem>>, vector<1x1x32xf32>
    %80 = vector.shape_cast %79 : vector<1x1x32xf32> to vector<1x32xf32>
    %81 = vector.shape_cast %80 : vector<1x32xf32> to vector<1x1x32xf32>
    %82 = vector.broadcast %81 : vector<1x1x32xf32> to vector<2x8x32xf32>
    %83 = arith.addf %78, %82 : vector<2x8x32xf32>
    %84 = arith.addf %3, %83 : vector<2x8x32xf32>
    %c0_43 = arith.constant 0 : index
    %c0_44 = arith.constant 0 : index
    %c0_45 = arith.constant 0 : index
    %85 = vector.load %arg15[%c0_43, %c0_44, %c0_45] : memref<1x1x32xf32, #tpu.memory_space<vmem>>, vector<1x1x32xf32>
    %86 = vector.shape_cast %85 : vector<1x1x32xf32> to vector<1x32xf32>
    %c0_46 = arith.constant 0 : index
    %c0_47 = arith.constant 0 : index
    %c0_48 = arith.constant 0 : index
    %87 = vector.load %arg16[%c0_46, %c0_47, %c0_48] : memref<1x1x32xf32, #tpu.memory_space<vmem>>, vector<1x1x32xf32>
    %88 = vector.shape_cast %87 : vector<1x1x32xf32> to vector<1x32xf32>
    %cst_49 = arith.constant dense<0.000000e+00> : vector<2x8xf32>
    %89 = vector.multi_reduction <add>, %84, %cst_49 [2] : vector<2x8x32xf32> to vector<2x8xf32>
    %90 = vector.shape_cast %89 : vector<2x8xf32> to vector<2x8x1xf32>
    %cst_50 = arith.constant 3.200000e+01 : f32
    %91 = vector.broadcast %cst_50 : f32 to vector<2x8x1xf32>
    %92 = arith.divf %90, %91 : vector<2x8x1xf32>
    %93 = vector.broadcast %92 : vector<2x8x1xf32> to vector<2x8x32xf32>
    %94 = arith.subf %84, %93 : vector<2x8x32xf32>
    %95 = arith.mulf %94, %94 : vector<2x8x32xf32>
    %cst_51 = arith.constant dense<0.000000e+00> : vector<2x8xf32>
    %96 = vector.multi_reduction <add>, %95, %cst_51 [2] : vector<2x8x32xf32> to vector<2x8xf32>
    %97 = vector.shape_cast %96 : vector<2x8xf32> to vector<2x8x1xf32>
    %cst_52 = arith.constant 3.200000e+01 : f32
    %98 = vector.broadcast %cst_52 : f32 to vector<2x8x1xf32>
    %99 = arith.divf %97, %98 : vector<2x8x1xf32>
    %100 = vector.broadcast %92 : vector<2x8x1xf32> to vector<2x8x32xf32>
    %101 = arith.subf %84, %100 : vector<2x8x32xf32>
    %cst_53 = arith.constant 9.99999996E-13 : f32
    %102 = vector.broadcast %cst_53 : f32 to vector<2x8x1xf32>
    %103 = arith.addf %99, %102 : vector<2x8x1xf32>
    %104 = math.rsqrt %103 : vector<2x8x1xf32>
    %105 = vector.broadcast %104 : vector<2x8x1xf32> to vector<2x8x32xf32>
    %106 = arith.mulf %101, %105 : vector<2x8x32xf32>
    %107 = vector.shape_cast %86 : vector<1x32xf32> to vector<1x1x32xf32>
    %108 = vector.broadcast %107 : vector<1x1x32xf32> to vector<2x8x32xf32>
    %109 = arith.mulf %106, %108 : vector<2x8x32xf32>
    %110 = vector.shape_cast %88 : vector<1x32xf32> to vector<1x1x32xf32>
    %111 = vector.broadcast %110 : vector<1x1x32xf32> to vector<2x8x32xf32>
    %112 = arith.addf %109, %111 : vector<2x8x32xf32>
    %113 = vector.shape_cast %112 : vector<2x8x32xf32> to vector<16x32xf32>
    %c0_54 = arith.constant 0 : index
    %c0_55 = arith.constant 0 : index
    %c0_56 = arith.constant 0 : index
    %114 = vector.load %arg17[%c0_54, %c0_55, %c0_56] : memref<1x32x64xf32, #tpu.memory_space<vmem>>, vector<1x32x64xf32>
    %115 = vector.shape_cast %114 : vector<1x32x64xf32> to vector<32x64xf32>
    %cst_57 = arith.constant dense<0.000000e+00> : vector<16x64xf32>
    %116 = tpu.matmul %113, %115, %cst_57 {dimension_numbers = #tpu.dot_dimension_numbers<[1], [0], [0], [1], [0, 0, 1, 1], [], []>} : vector<16x32xf32>, vector<32x64xf32>, vector<16x64xf32> -> vector<16x64xf32>
    %117 = vector.shape_cast %116 : vector<16x64xf32> to vector<2x8x64xf32>
    %c0_58 = arith.constant 0 : index
    %c0_59 = arith.constant 0 : index
    %c0_60 = arith.constant 0 : index
    %118 = vector.load %arg18[%c0_58, %c0_59, %c0_60] : memref<1x1x64xf32, #tpu.memory_space<vmem>>, vector<1x1x64xf32>
    %119 = vector.shape_cast %118 : vector<1x1x64xf32> to vector<1x64xf32>
    %120 = vector.shape_cast %119 : vector<1x64xf32> to vector<1x1x64xf32>
    %121 = vector.broadcast %120 : vector<1x1x64xf32> to vector<2x8x64xf32>
    %122 = arith.addf %117, %121 : vector<2x8x64xf32>
    %cst_61 = arith.constant 5.000000e-01 : f32
    %123 = vector.broadcast %cst_61 : f32 to vector<2x8x64xf32>
    %124 = arith.mulf %123, %122 : vector<2x8x64xf32>
    %cst_62 = arith.constant 4.471500e-02 : f32
    %125 = vector.broadcast %cst_62 : f32 to vector<2x8x64xf32>
    %126 = arith.mulf %125, %122 : vector<2x8x64xf32>
    %127 = arith.mulf %126, %122 : vector<2x8x64xf32>
    %128 = arith.mulf %127, %122 : vector<2x8x64xf32>
    %129 = arith.addf %122, %128 : vector<2x8x64xf32>
    %cst_63 = arith.constant 0.797884583 : f32
    %130 = vector.broadcast %cst_63 : f32 to vector<2x8x64xf32>
    %131 = arith.mulf %130, %129 : vector<2x8x64xf32>
    %132 = math.tanh %131 : vector<2x8x64xf32>
    %cst_64 = arith.constant 1.000000e+00 : f32
    %133 = vector.broadcast %cst_64 : f32 to vector<2x8x64xf32>
    %134 = arith.addf %133, %132 : vector<2x8x64xf32>
    %135 = arith.mulf %124, %134 : vector<2x8x64xf32>
    %136 = vector.shape_cast %135 : vector<2x8x64xf32> to vector<16x64xf32>
    %c0_65 = arith.constant 0 : index
    %c0_66 = arith.constant 0 : index
    %c0_67 = arith.constant 0 : index
    %137 = vector.load %arg19[%c0_65, %c0_66, %c0_67] : memref<1x64x32xf32, #tpu.memory_space<vmem>>, vector<1x64x32xf32>
    %138 = vector.shape_cast %137 : vector<1x64x32xf32> to vector<64x32xf32>
    %cst_68 = arith.constant dense<0.000000e+00> : vector<16x32xf32>
    %139 = tpu.matmul %136, %138, %cst_68 {dimension_numbers = #tpu.dot_dimension_numbers<[1], [0], [0], [1], [0, 0, 1, 1], [], []>} : vector<16x64xf32>, vector<64x32xf32>, vector<16x32xf32> -> vector<16x32xf32>
    %140 = vector.shape_cast %139 : vector<16x32xf32> to vector<2x8x32xf32>
    %c0_69 = arith.constant 0 : index
    %c0_70 = arith.constant 0 : index
    %c0_71 = arith.constant 0 : index
    %141 = vector.load %arg20[%c0_69, %c0_70, %c0_71] : memref<1x1x32xf32, #tpu.memory_space<vmem>>, vector<1x1x32xf32>
    %142 = vector.shape_cast %141 : vector<1x1x32xf32> to vector<1x32xf32>
    %143 = vector.shape_cast %142 : vector<1x32xf32> to vector<1x1x32xf32>
    %144 = vector.broadcast %143 : vector<1x1x32xf32> to vector<2x8x32xf32>
    %145 = arith.addf %140, %144 : vector<2x8x32xf32>
    %146 = arith.addf %112, %145 : vector<2x8x32xf32>
    %c0_72 = arith.constant 0 : index
    %c0_73 = arith.constant 0 : index
    %c0_74 = arith.constant 0 : index
    %147 = vector.load %arg21[%c0_72, %c0_73, %c0_74] : memref<1x1x32xf32, #tpu.memory_space<vmem>>, vector<1x1x32xf32>
    %148 = vector.shape_cast %147 : vector<1x1x32xf32> to vector<1x32xf32>
    %c0_75 = arith.constant 0 : index
    %c0_76 = arith.constant 0 : index
    %c0_77 = arith.constant 0 : index
    %149 = vector.load %arg22[%c0_75, %c0_76, %c0_77] : memref<1x1x32xf32, #tpu.memory_space<vmem>>, vector<1x1x32xf32>
    %150 = vector.shape_cast %149 : vector<1x1x32xf32> to vector<1x32xf32>
    %cst_78 = arith.constant dense<0.000000e+00> : vector<2x8xf32>
    %151 = vector.multi_reduction <add>, %146, %cst_78 [2] : vector<2x8x32xf32> to vector<2x8xf32>
    %152 = vector.shape_cast %151 : vector<2x8xf32> to vector<2x8x1xf32>
    %cst_79 = arith.constant 3.200000e+01 : f32
    %153 = vector.broadcast %cst_79 : f32 to vector<2x8x1xf32>
    %154 = arith.divf %152, %153 : vector<2x8x1xf32>
    %155 = vector.broadcast %154 : vector<2x8x1xf32> to vector<2x8x32xf32>
    %156 = arith.subf %146, %155 : vector<2x8x32xf32>
    %157 = arith.mulf %156, %156 : vector<2x8x32xf32>
    %cst_80 = arith.constant dense<0.000000e+00> : vector<2x8xf32>
    %158 = vector.multi_reduction <add>, %157, %cst_80 [2] : vector<2x8x32xf32> to vector<2x8xf32>
    %159 = vector.shape_cast %158 : vector<2x8xf32> to vector<2x8x1xf32>
    %cst_81 = arith.constant 3.200000e+01 : f32
    %160 = vector.broadcast %cst_81 : f32 to vector<2x8x1xf32>
    %161 = arith.divf %159, %160 : vector<2x8x1xf32>
    %162 = vector.broadcast %154 : vector<2x8x1xf32> to vector<2x8x32xf32>
    %163 = arith.subf %146, %162 : vector<2x8x32xf32>
    %cst_82 = arith.constant 9.99999996E-13 : f32
    %164 = vector.broadcast %cst_82 : f32 to vector<2x8x1xf32>
    %165 = arith.addf %161, %164 : vector<2x8x1xf32>
    %166 = math.rsqrt %165 : vector<2x8x1xf32>
    %167 = vector.broadcast %166 : vector<2x8x1xf32> to vector<2x8x32xf32>
    %168 = arith.mulf %163, %167 : vector<2x8x32xf32>
    %169 = vector.shape_cast %148 : vector<1x32xf32> to vector<1x1x32xf32>
    %170 = vector.broadcast %169 : vector<1x1x32xf32> to vector<2x8x32xf32>
    %171 = arith.mulf %168, %170 : vector<2x8x32xf32>
    %172 = vector.shape_cast %150 : vector<1x32xf32> to vector<1x1x32xf32>
    %173 = vector.broadcast %172 : vector<1x1x32xf32> to vector<2x8x32xf32>
    %174 = arith.addf %171, %173 : vector<2x8x32xf32>
    %c0_83 = arith.constant 0 : index
    %c0_84 = arith.constant 0 : index
    %c0_85 = arith.constant 0 : index
    %175 = vector.load %arg23[%c0_83, %c0_84, %c0_85] : memref<2x8x32xf32, #tpu.memory_space<vmem>>, vector<2x8x32xf32>
    tpu.vector_store %arg23[%c0_83, %c0_84, %c0_85], %174 {strides = array<i32>} : memref<2x8x32xf32, #tpu.memory_space<vmem>>, vector<2x8x32xf32>,
    return
  }
  func.func @transform_0(%arg0: i32) -> (i32, i32, i32) {
    %c0_i32 = arith.constant 0 : i32
    %c0_i32_0 = arith.constant 0 : i32
    %c0_i32_1 = arith.constant 0 : i32
    %c0_i32_2 = arith.constant 0 : i32
    return %c0_i32, %c0_i32_0, %c0_i32_1 : i32, i32, i32
  }
  func.func @transform_1(%arg0: i32) -> (i32, i32) {
    %c0_i32 = arith.constant 0 : i32
    %c0_i32_0 = arith.constant 0 : i32
    %c0_i32_1 = arith.constant 0 : i32
    return %c0_i32, %c0_i32_0 : i32, i32
  }
  func.func @transform_2(%arg0: i32) -> (i32, i32) {
    %c0_i32 = arith.constant 0 : i32
    %c0_i32_0 = arith.constant 0 : i32
    %c0_i32_1 = arith.constant 0 : i32
    return %c0_i32, %c0_i32_0 : i32, i32
  }
  func.func @transform_3(%arg0: i32) -> (i32, i32) {
    %c0_i32 = arith.constant 0 : i32
    %c0_i32_0 = arith.constant 0 : i32
    %c0_i32_1 = arith.constant 0 : i32
    return %c0_i32, %c0_i32_0 : i32, i32
  }
  func.func @transform_4(%arg0: i32) -> (i32, i32) {
    %c0_i32 = arith.constant 0 : i32
    %c0_i32_0 = arith.constant 0 : i32
    %c0_i32_1 = arith.constant 0 : i32
    return %c0_i32, %c0_i32_0 : i32, i32
  }
  func.func @transform_5(%arg0: i32) -> (i32, i32, i32) {
    %c0_i32 = arith.constant 0 : i32
    %c0_i32_0 = arith.constant 0 : i32
    %c0_i32_1 = arith.constant 0 : i32
    %c0_i32_2 = arith.constant 0 : i32
    return %c0_i32, %c0_i32_0, %c0_i32_1 : i32, i32, i32
  }
  func.func @transform_6(%arg0: i32) -> (i32, i32, i32) {
    %c0_i32 = arith.constant 0 : i32
    %c0_i32_0 = arith.constant 0 : i32
    %c0_i32_1 = arith.constant 0 : i32
    return %arg0, %c0_i32, %c0_i32_0 : i32, i32, i32
  }
  func.func @transform_7(%arg0: i32) -> (i32, i32, i32) {
    %c0_i32 = arith.constant 0 : i32
    %c0_i32_0 = arith.constant 0 : i32
    %c0_i32_1 = arith.constant 0 : i32
    return %arg0, %c0_i32, %c0_i32_0 : i32, i32, i32
  }
  func.func @transform_8(%arg0: i32) -> (i32, i32, i32) {
    %c0_i32 = arith.constant 0 : i32
    %c0_i32_0 = arith.constant 0 : i32
    %c0_i32_1 = arith.constant 0 : i32
    return %arg0, %c0_i32, %c0_i32_0 : i32, i32, i32
  }
  func.func @transform_9(%arg0: i32) -> (i32, i32, i32) {
    %c0_i32 = arith.constant 0 : i32
    %c0_i32_0 = arith.constant 0 : i32
    %c0_i32_1 = arith.constant 0 : i32
    return %arg0, %c0_i32, %c0_i32_0 : i32, i32, i32
  }
  func.func @transform_10(%arg0: i32) -> (i32, i32, i32) {
    %c0_i32 = arith.constant 0 : i32
    %c0_i32_0 = arith.constant 0 : i32
    %c0_i32_1 = arith.constant 0 : i32
    return %arg0, %c0_i32, %c0_i32_0 : i32, i32, i32
  }
  func.func @transform_11(%arg0: i32) -> (i32, i32, i32) {
    %c0_i32 = arith.constant 0 : i32
    %c0_i32_0 = arith.constant 0 : i32
    %c0_i32_1 = arith.constant 0 : i32
    return %arg0, %c0_i32, %c0_i32_0 : i32, i32, i32
  }
  func.func @transform_12(%arg0: i32) -> (i32, i32, i32) {
    %c0_i32 = arith.constant 0 : i32
    %c0_i32_0 = arith.constant 0 : i32
    %c0_i32_1 = arith.constant 0 : i32
    return %arg0, %c0_i32, %c0_i32_0 : i32, i32, i32
  }
  func.func @transform_13(%arg0: i32) -> (i32, i32, i32) {
    %c0_i32 = arith.constant 0 : i32
    %c0_i32_0 = arith.constant 0 : i32
    %c0_i32_1 = arith.constant 0 : i32
    return %arg0, %c0_i32, %c0_i32_0 : i32, i32, i32
  }
  func.func @transform_14(%arg0: i32) -> (i32, i32, i32) {
    %c0_i32 = arith.constant 0 : i32
    %c0_i32_0 = arith.constant 0 : i32
    %c0_i32_1 = arith.constant 0 : i32
    return %arg0, %c0_i32, %c0_i32_0 : i32, i32, i32
  }
  func.func @transform_15(%arg0: i32) -> (i32, i32, i32) {
    %c0_i32 = arith.constant 0 : i32
    %c0_i32_0 = arith.constant 0 : i32
    %c0_i32_1 = arith.constant 0 : i32
    return %arg0, %c0_i32, %c0_i32_0 : i32, i32, i32
  }
  func.func @transform_16(%arg0: i32) -> (i32, i32, i32) {
    %c0_i32 = arith.constant 0 : i32
    %c0_i32_0 = arith.constant 0 : i32
    %c0_i32_1 = arith.constant 0 : i32
    return %arg0, %c0_i32, %c0_i32_0 : i32, i32, i32
  }
  func.func @transform_17(%arg0: i32) -> (i32, i32, i32) {
    %c0_i32 = arith.constant 0 : i32
    %c0_i32_0 = arith.constant 0 : i32
    %c0_i32_1 = arith.constant 0 : i32
    return %arg0, %c0_i32, %c0_i32_0 : i32, i32, i32
  }
  func.func @transform_18(%arg0: i32) -> (i32, i32, i32) {
    %c0_i32 = arith.constant 0 : i32
    %c0_i32_0 = arith.constant 0 : i32
    %c0_i32_1 = arith.constant 0 : i32
    return %arg0, %c0_i32, %c0_i32_0 : i32, i32, i32
  }
  func.func @transform_19(%arg0: i32) -> (i32, i32, i32) {
    %c0_i32 = arith.constant 0 : i32
    %c0_i32_0 = arith.constant 0 : i32
    %c0_i32_1 = arith.constant 0 : i32
    return %arg0, %c0_i32, %c0_i32_0 : i32, i32, i32
  }
  func.func @transform_20(%arg0: i32) -> (i32, i32, i32) {
    %c0_i32 = arith.constant 0 : i32
    %c0_i32_0 = arith.constant 0 : i32
    %c0_i32_1 = arith.constant 0 : i32
    return %arg0, %c0_i32, %c0_i32_0 : i32, i32, i32
  }
  func.func @transform_21(%arg0: i32) -> (i32, i32, i32) {
    %c0_i32 = arith.constant 0 : i32
    %c0_i32_0 = arith.constant 0 : i32
    %c0_i32_1 = arith.constant 0 : i32
    return %arg0, %c0_i32, %c0_i32_0 : i32, i32, i32
  }
  func.func @transform_22(%arg0: i32) -> (i32, i32, i32) {
    %c0_i32 = arith.constant 0 : i32
    %c0_i32_0 = arith.constant 0 : i32
    %c0_i32_1 = arith.constant 0 : i32
    %c0_i32_2 = arith.constant 0 : i32
    return %c0_i32, %c0_i32_0, %c0_i32_1 : i32, i32, i32
  }
}

</mosaic_0001>

<bundles_post_ra>
// kernel: bert_encoder_forward.1
= control target key start
LH: loop header
LB: loop body
LE: loop exit
PB: predicated region body
PF: predicated region fallthrough
CT: control target
= control target key end

     0   :  { %s3282_s0 = inlined_call_operand.vmem [shape: f32[2,8,32], index: 0, kind: input, shape index: {}]   ;;  %s3283_s1 = inlined_call_operand.vmem [shape: f32[8,32], index: 1, kind: input, shape index: {}]   ;;  %s3284_s2 = inlined_call_operand.vmem [shape: f32[1,32], index: 2, kind: input, shape index: {}]   ;;  %s3285_s3 = inlined_call_operand.vmem [shape: f32[1,32], index: 3, kind: input, shape index: {}]   ;;  %s3286_s4 = inlined_call_operand.vmem [shape: f32[1,32], index: 4, kind: input, shape index: {}]   ;;  %s3287_s5 = inlined_call_operand.vmem [shape: f32[2,1,8], index: 5, kind: input, shape index: {}]   ;;  %s3288_s6 = inlined_call_operand.vmem [shape: f32[2,32,32], index: 6, kind: input, shape index: {}]   ;;  %s3289_s7 = inlined_call_operand.vmem [shape: f32[2,1,32], index: 7, kind: input, shape index: {}]   ;;  %s3290_s8 = inlined_call_operand.vmem [shape: f32[2,32,32], index: 8, kind: input, shape index: {}]   ;;  %s3291_s9 = inlined_call_operand.vmem [shape: f32[2,1,32], index: 9, kind: input, shape index: {}]   ;;  %s3292_s10 = inlined_call_operand.vmem [shape: f32[2,32,32], index: 10, kind: input, shape index: {}]   ;;  %s3293_s11 = inlined_call_operand.vmem [shape: f32[2,1,32], index: 11, kind: input, shape index: {}]   ;;  %s3294_s12 = inlined_call_operand.vmem [shape: f32[2,32,32], index: 12, kind: input, shape index: {}]   ;;  %s3295_s13 = inlined_call_operand.vmem [shape: f32[2,1,32], index: 13, kind: input, shape index: {}]   ;;  %s3296_s14 = inlined_call_operand.vmem [shape: f32[2,1,32], index: 14, kind: input, shape index: {}]   ;;  %s3297_s15 = inlined_call_operand.vmem [shape: f32[2,1,32], index: 15, kind: input, shape index: {}]   ;;  %s3298_s16 = inlined_call_operand.vmem [shape: f32[2,32,64], index: 16, kind: input, shape index: {}]   ;;  %s3299_s17 = inlined_call_operand.vmem [shape: f32[2,1,64], index: 17, kind: input, shape index: {}]   ;;  %s3300_s18 = inlined_call_operand.vmem [shape: f32[2,64,32], index: 18, kind: input, shape index: {}]   ;;  %s3301_s19 = inlined_call_operand.vmem [shape: f32[2,1,32], index: 19, kind: input, shape index: {}]   ;;  %s3302_s20 = inlined_call_operand.vmem [shape: f32[2,1,32], index: 20, kind: input, shape index: {}]   ;;  %s3303_s21 = inlined_call_operand.vmem [shape: f32[2,1,32], index: 21, kind: input, shape index: {}]   ;;  %s3304_s22 = inlined_call_operand.vmem [shape: f32[2,8,32], index: 22, kind: output, shape index: {}]  }
   0x1   :  { %3311 = sst [smem:[#allocation4_spill]] %s3282_s0 }
   0x2   :  { %3312 = sst [smem:[#allocation5_spill]] %s3283_s1 }
   0x3   :  { %3313 = sst [smem:[#allocation6_spill]] %s3284_s2 }
   0x4   :  { %3314 = sst [smem:[#allocation7_spill]] %s3285_s3  ;;  %s2973_s3 = smov 0  }
   0x5   :  { %3315 = sst [smem:[#allocation8_spill]] %s3286_s4 }
   0x6   :  { %3316 = sst [smem:[#allocation9_spill]] %s3287_s5 }
   0x7   :  { %3317 = sst [smem:[#allocation10_spill]] %s3288_s6 }
   0x8   :  { %3318 = sst [smem:[#allocation11_spill]] %s3289_s7 }
   0x9   :  { %3319 = sst [smem:[#allocation12_spill]] %s3290_s8 }
   0xa   :  { %3320 = sst [smem:[#allocation13_spill]] %s3292_s10 }
   0xb   :  { %3321 = sst [smem:[#allocation14_spill]] %s3294_s12 }
   0xc   :  { %3322 = sst [smem:[#allocation15_spill]] %s3297_s15 }
   0xd   :  { %3323 = sst [smem:[#allocation16_spill]] %s3298_s16 }
   0xe   :  { %3324 = sst [smem:[#allocation17_spill]] %s3302_s20 }
   0xf   :  { %3325 = sst [smem:[#allocation18_spill]] %s3303_s21 }
  0x10   :  { %3326 = sst [smem:[#allocation19_spill]] %s3304_s22 }
  0x11 LB: > { %3327 = sst [smem:[#allocation2_spill]] %s2852_s3  ;;  %s2512_s28 = sadd.s32 4294967295, %s2852_s3   ;;  %s2852_s3 = sphi %s2973_s3, %s32_s3  }
  0x12   : > { %p2515_p0 = scmp.ge.s32.totalorder %s2852_s3, 1  ;;  %p737_p1 = scmp.lt.s32.totalorder %s2852_s3, 3 }
  0x14   : > { %p738_p2 = pnand %p2515_p0, %p737_p1 }
  0x16   : > { %741 = sbr.rel (%p738_p2) target bundleno = 3307 (0xceb), region = 108 }
  0x1d   : > { %p849_p3 = scmp.lt.s32.totalorder %s2512_s28, 1  ;;  %s3329_s24 = sld [smem:[#allocation10_spill]] }
  0x1e   : > { %s3330_s8 = sld [smem:[#allocation12_spill]]  ;;  %s3331_s10 = sld [smem:[#allocation13_spill]] }
  0x1f   : > { %s2981_s29 = scalar_select %p849_p3, %s2512_s28, 1 }
  0x20   : > { %s3333_s12 = sld [smem:[#allocation14_spill]]  ;;  %s3335_s16 = sld [smem:[#allocation16_spill]] }
  0x21   : > { %s2570_s30 = sshll.u32 %s2981_s29, 5  ;;  %s3336_s22 = sld [smem:[#allocation17_spill]] }
  0x22   : > { %p2528_p4 = scmp.ne.s32.totalorder %s2512_s28, 0 }
  0x23   : > { %s2991_s6 = scalar_lea.vmem %s3329_s24, %s2570_s30  ;;  %s3338_s1 = sld [smem:[#allocation4_spill]] (!%p2528_p4)  ;;  %vm929_vm0 = vcmask (!%p2528_p4), 261120  }
  0x24   : > { %s2996_s2 = scalar_lea.vmem %s3330_s8, %s2570_s30  ;;  %s3005_s4 = scalar_lea.vmem %s3331_s10, %s2570_s30 }
  0x25   : > { %3332 = sst [smem:[#allocation3_spill]] %s3005_s4  ;;  %s3339_s26 = sld [smem:[#allocation5_spill]] (!%p2528_p4) }
  0x26   : > { %s3014_s7 = scalar_lea.vmem %s3333_s12, %s2570_s30  ;;  %s3031_s0 = scalar_lea.vmem %s3335_s16, %s2570_s30 }
  0x27   : > { %s2575_s12 = sshll.u32 %s2981_s29, 6  ;;  %s905_s4 = scalar_lea.vmem %s3336_s22, %s2981_s29 }
  0x28   : > { %s3041_s8 = scalar_lea.vmem %s3300_s18, %s2575_s12  ;;  %s3337_s16 = sld [smem:[#allocation18_spill]] }
  0x29   : > { %912 = sbr.rel (%p2528_p4) target bundleno = 368 (0x170), region = 112  ;;  %v913_v0 = vld [vmem:[%s3338_s1] sm:$0xff] (!%p2528_p4)  ;;  %s3340_s20 = sld [smem:[#allocation6_spill]] (!%p2528_p4)  ;;  %v914_v4 = vld [vmem:[%s3338_s1 + $0x8] sm:$0xff] (!%p2528_p4) }
  0x2a   : > { %s3342_s23 = sld [smem:[#allocation8_spill]] (!%p2528_p4)  ;;  %s3343_s12 = sld [smem:[#allocation19_spill]] (!%p2528_p4) }
  0x2b   : > { %v915_v1 = vld [vmem:[%s3339_s26] sm:$0xff] (!%p2528_p4) }
  0x2c   : > { %v916_v3 = vadd.f32 (!%p2528_p4), %v915_v1, %v913_v0  ;;  %v917_v5 = vadd.f32 (!%p2528_p4), %v915_v1, %v914_v4 }
  0x2e   : > { %s908_s15 = scalar_lea.vmem %s3337_s16, %s2981_s29 }
  0x2f   : > { %v2529_v2 = vld [vmem:[%s3340_s20] ss:$0 sm:$0xff] (!%p2528_p4)  ;;  %s3341_s20 = sld [smem:[#allocation7_spill]] (!%p2528_p4) }
  0x30   : > { %v925_v6 = vadd.f32 %v2529_v2, %v916_v3  ;;  %v926_v7 = vadd.f32 %v2529_v2, %v917_v5  ;;  %v2531_v29 = vld [vmem:[%s3342_s23] ss:$0 sm:$0xff] }
  0x32   : > { %v930_v8 = vsel %vm929_vm0, %v925_v6, 0.0  ;;  %v933_v9 = vsel %vm929_vm0, %v926_v7, 0.0 }
  0x33   : > { %931 = vadd.xlane.f32.xlu0 %v930_v8 }
  0x35   : > { %v2530_v27 = vld [vmem:[%s3341_s20] ss:$0 sm:$0xff] }
  0x37   : > { %934 = vadd.xlane.f32.xlu0 %v933_v9 }
  0xc0   : > { %v932_v10 = vpop.xlane.xlu0 %931 }
  0xc1   : > { %v937_v11 = vmul.f32 0.03125, %v932_v10 }
  0xc3   : > { %v939_v12 = vsub.f32 %v925_v6, %v937_v11 }
  0xc4   : > { %v935_v13 = vpop.xlane.xlu0 %934 }
  0xc5   : > { %v938_v14 = vmul.f32 0.03125, %v935_v13  ;;  %v941_v15 = vmul.f32 %v939_v12, %v939_v12 }
  0xc7   : > { %v940_v16 = vsub.f32 %v926_v7, %v938_v14  ;;  %v943_v17 = vsel %vm929_vm0, %v941_v15, 0.0 }
  0xc8   : > { %944 = vadd.xlane.f32.xlu1 %v943_v17 }
  0xc9   : > { %v942_v18 = vmul.f32 %v940_v16, %v940_v16 }
  0xcb   : > { %v946_v19 = vsel %vm929_vm0, %v942_v18, 0.0 }
  0xcc   : > { %947 = vadd.xlane.f32.xlu1 %v946_v19 }
 0x155   : > { %v945_v20 = vpop.xlane.xlu1 %944 }
 0x156   : > { %v949_v21 = vmul.f32 0.03125, %v945_v20 }
 0x158   : > { %v951_v22 = vadd.f32 1e-12, %v949_v21 }
 0x159   : > { %v948_v23 = vpop.xlane.xlu1 %947 }
 0x15a   : > { %2814 = vrsqrt.f32 %v951_v22  ;;  %v950_v24 = vmul.f32 0.03125, %v948_v23 }
 0x15c   : > { %v952_v25 = vadd.f32 1e-12, %v950_v24 }
 0x15e   : > { %2816 = vrsqrt.f32 %v952_v25 }
 0x164   : > { %v2815_v26 = vpop.eup %2814 }
 0x165   : > { %v955_v28 = vmul.f32 %v2815_v26, %v939_v12 }
 0x167   : > { %v963_v30 = vmul.f32 %v2530_v27, %v955_v28 }
 0x168   : > { %v2817_v31 = vpop.eup %2816 }
 0x169   : > { %v971_v32 = vadd.f32 %v2531_v29, %v963_v30  ;;  %v956_v33 = vmul.f32 %v2817_v31, %v940_v16 }
 0x16b   : > { %973 = vst.msk [vmem:[%s3343_s12] sm:$0xff] %vm929_vm0, %v971_v32  ;;  %v964_v34 = vmul.f32 %v2530_v27, %v956_v33 }
 0x16d   : > { %v972_v35 = vadd.f32 %v2531_v29, %v964_v34 }
 0x16f   : > { %974 = vst.msk [vmem:[%s3343_s12 + $0x8] sm:$0xff] %vm929_vm0, %v972_v35 }
 0x170 PF: > { %v979_v36 = vld [vmem:[%s2991_s6] sm:$0xff]  ;;  %v980_v37 = vld [vmem:[%s2991_s6 + $0x8] sm:$0xff]  ;;  %v981_v38 = vld [vmem:[%s2991_s6 + $0x10] sm:$0xff]  ;;  %vm983_vm1 = vcmask 261120   ;;  %s3344_s10 = sld [smem:[#allocation19_spill]]  ;;  %v2854_v50 = vmov 0.0   ;;  %s3345_s28 = scalar_lea.vmem %s3291_s9, %s2981_s29 }
 0x171   : > { %v2746_v39 = vpack.c.bf16 %v980_v37, %v979_v36  ;;  %v982_v40 = vld [vmem:[%s2991_s6 + $0x18] sm:$0xff]  ;;  %v1074_v43 = vld [vmem:[%s2996_s2] sm:$0xff]  ;;  %v1075_v44 = vld [vmem:[%s2996_s2 + $0x8] sm:$0xff]  ;;  %vm2855_vm2 = vmmov 0   ;;  %vm1250_vm3 = vcmask 130048   ;;  %s3346_s30 = sld [smem:[#allocation11_spill]]  ;;  %s3351_s20 = scalar_lea.vmem %s3295_s13, %s2981_s29 }
 0x172   : > { %v2750_v42 = vpack.c.bf16 %v982_v40, %v981_v38  ;;  %v2754_v45 = vpack.c.bf16 %v1075_v44, %v1074_v43  ;;  %v1076_v46 = vld [vmem:[%s2996_s2 + $0x10] sm:$0xff]  ;;  %v1077_v47 = vld [vmem:[%s2996_s2 + $0x18] sm:$0xff]  ;;  %v2537_v53 = vld [vmem:[%s3345_s28] ss:$0 sm:$0xff]  ;;  %s3348_s5 = sld [smem:[#allocation3_spill]]  ;;  %s2856_s24 = smov 112  }
 0x173   : > { %2747 = vmatprep.subr.bf16.mxu1 %v2746_v39  ;;  %v2758_v49 = vpack.c.bf16 %v1077_v47, %v1076_v46  ;;  %s3349_s26 = sld [smem:[#allocation9_spill]]  ;;  %vm1419_vm4 = vcmask 64512   ;;  %s3350_s2 = scalar_lea.vmem %s3293_s11, %s2981_s29  ;;  %vm2195_vm5 = vcmask 523264  }
 0x174   : > { %2749 = vmatpush3.bf16.msra.mxu1 %v2746_v39  ;;  %v2540_v26 = vld [vmem:[%s3350_s2] ss:$0 sm:$0xff]  ;;  %s2857_s16 = smov 16   ;;  %s3355_s27 = scalar_lea.vmem %s3299_s17, %s2981_s29 }
 0x175   : > { %2751 = vmatprep.subr.bf16.mxu1 %v2750_v42  ;;  %s3356_s22 = scalar_lea.vmem %s3301_s19, %s2981_s29 }
 0x176   : > { %v3092_v41 = vld [vmem:[%s3344_s10] sm:$0xff]  ;;  %v3105_v48 = vld [vmem:[%s3344_s10 + $0x8] sm:$0xff] }
 0x177   : > { %2640 = vmatprep.mubr.msk.f32.mxu1 %vm983_vm1, %v3092_v41  ;;  %2662 = vmatprep.mubr.msk.f32.mxu0 %vm983_vm1, %v3092_v41  ;;  %s3347_s23 = scalar_lea.vmem %s3346_s30, %s2981_s29 }
 0x178   : > { %2753 = vmatpush3.bf16.msra.mxu1 %v2750_v42  ;;  %v2534_v57 = vld [vmem:[%s3347_s23] ss:$0 sm:$0xff]  ;;  %v1163_v62 = vld [vmem:[%s3348_s5 + $0x8] sm:$0xff]  ;;  %v1164_v63 = vld [vmem:[%s3348_s5 + $0x10] sm:$0xff]  ;;  %s3352_s23 = scalar_lea.vmem %s3296_s14, %s2981_s29 }
 0x179   : > { %2755 = vmatprep.subr.bf16.mxu1 %v2754_v45  ;;  %v1162_v61 = vld [vmem:[%s3348_s5] sm:$0xff]  ;;  %v1165_v1 = vld [vmem:[%s3348_s5 + $0x18] sm:$0xff] }
 0x17a   : > { %v2762_v0 = vpack.c.bf16 %v1163_v62, %v1162_v61  ;;  %v2766_v2 = vpack.c.bf16 %v1165_v1, %v1164_v63  ;;  %v3150_v4 = vld [vmem:[%s3349_s26] ss:$0 sm:$0xff]  ;;  %v3156_v9 = vld [vmem:[%s3349_s26 + $0x1] ss:$0 sm:$0xff] }
 0x17b   : > { %2641 = vmatmul.mubr.msk.f32.vlgmr.msra.gmra.mrb[0].mxu1 %vm983_vm1, %v3105_v48 }
 0x17c   : > { %2757 = vmatpush3.bf16.msra.mxu1 %v2754_v45  ;;  %2651 = vmatprep.mubr.msk.f32.mxu1 %vm983_vm1, %v3092_v41 }
 0x17d   : > { %2759 = vmatprep.subr.bf16.mxu1 %v2758_v49  ;;  %2763 = vmatprep.subr.bf16.mxu0 %v2762_v0 }
 0x17e   : > { %2765 = vmatpush3.bf16.msra.mxu0 %v2762_v0 }
 0x17f   : > { %2767 = vmatprep.subr.bf16.mxu0 %v2766_v2 }
 0x180   : > { %2761 = vmatpush3.bf16.msra.mxu1 %v2758_v49 }
 0x181   : > { %2665 = vmatprep.subr.mxu1 %v2854_v50 }
 0x182   : > { %2769 = vmatpush3.bf16.msra.mxu0 %v2766_v2 }
 0x183   : > { %2652 = vmatmul.mubr.msk.f32.vlgmr.msra.gmra.mrb[2].mxu1 %vm983_vm1, %v3105_v48  ;;  %2675 = vmatprep.subr.mxu0 %v2854_v50 }
 0x184   : > { %2667 = vmatprep.mubr.msk.f32.mxu1 %vm2855_vm2, %v2854_v50 }
 0x185   : > { %2663 = vmatmul.mubr.msk.f32.vlgmr.msra.gmra.mrb[0].mxu0 %vm983_vm1, %v3105_v48 }
 0x186   : > { %2677 = vmatprep.mubr.msk.f32.mxu0 %vm2855_vm2, %v2854_v50 }
 0x24e   : > { %v2642_v51 = vpop.f32.mrb[0].mxu1 }
 0x24f   : > { %v1056_v52 = vpop.f32.mrb[1].mxu1  ;;  %v1073_v60 = vadd.f32 %v2642_v51, %v2534_v57 }
 0x250   : > { %v1072_v59 = vadd.f32 %v2534_v57, %v1056_v52 }
 0x256   : > { %v2653_v54 = vpop.f32.mrb[2].mxu1 }
 0x257   : > { %v1161_v55 = vadd.f32 %v2653_v54, %v2537_v53  ;;  %v1144_v56 = vpop.f32.mrb[3].mxu1 }
 0x258   : > { %v1160_v58 = vadd.f32 %v2537_v53, %v1144_v56  ;;  %v2664_v25 = vpop.f32.mrb[0].mxu0 }
 0x259   : > { %1668 = vrot.lane.b32.xlu1 %v1161_v55, %s2856_s24  ;;  %v1232_v27 = vpop.f32.mrb[1].mxu0  ;;  %v1249_v28 = vadd.f32 %v2664_v25, %v2540_v26 }
 0x25a   : > { %2666 = vmatpush3.xpose.msk.msra.mxu1 %vm1250_vm3, %v1160_v58  ;;  %v1248_v29 = vadd.f32 %v2540_v26, %v1232_v27 }
 0x25b   : > { %2670 = vmatprep.subr.mxu1 %v2854_v50 }
 0x25c   : > { %2676 = vmatpush3.msra.mxu0 %v1248_v29 }
 0x25d   : > { %1588 = vrot.lane.b32.xlu1 %v1072_v59, %s2856_s24  ;;  %2668 = vmatmul.mubr.msk.f32.vlgmr.msra.gmra.mrb[4].mxu1 %vm1250_vm3, %v1072_v59 }
 0x25e   : > { %2671 = vmatpush3.xpose.msk.msra.mxu1 %vm1250_vm3, %v1161_v55  ;;  %2672 = vmatprep.mubr.msk.f32.mxu1 %vm2855_vm2, %v2854_v50 }
 0x25f   : > { %2680 = vmatprep.subr.mxu1 %v2854_v50  ;;  %2685 = vmatprep.subr.mxu0 %v2854_v50 }
 0x261   : > { %2673 = vmatmul.mubr.msk.f32.vlgmr.msra.gmra.mrb[6].mxu1 %vm1250_vm3, %v1073_v60 }
 0x262   : > { %2682 = vmatprep.mubr.msk.f32.mxu1 %vm2855_vm2, %v2854_v50  ;;  %2681 = vmatpush3.msra.mxu1 %v1249_v28 }
 0x263   : > { %2690 = vmatprep.subr.mxu1 %v2854_v50 }
 0x2cb   : > { %v1669_v30 = vpop.permute.xlu1 %1668 }
 0x2cf   : > { %v1589_v31 = vpop.permute.xlu1 %1588 }
 0x330   : > { %v1323_v3 = vpop.f32.mrb[4].mxu1 }
 0x331   : > { %v1403_v5 = vmul.f32 0.25, %v1323_v3  ;;  %v2669_v6 = vpop.f32.mrb[5].mxu1 }
 0x333   : > { %v1417_v7 = vadd.f32 %v3150_v4, %v1403_v5 }
 0x334   : > { %v1399_v8 = vpop.f32.mrb[6].mxu1 }
 0x335   : > { %v1404_v10 = vmul.f32 0.25, %v1399_v8  ;;  %v2674_v11 = vpop.f32.mrb[7].mxu1  ;;  %v1420_v12 = vsel %vm1419_vm4, %v1417_v7, -inf }
 0x336   : > { %1421 = vmax.xlane.f32.xlu0 %v1420_v12  ;;  %v1935_v11 = vld [vmem:[%s3014_s7 + $0x8] sm:$0xff] }
 0x337   : > { %v1418_v13 = vadd.f32 %v3156_v9, %v1404_v10  ;;  %v1934_v10 = vld [vmem:[%s3014_s7] sm:$0xff] }
 0x338   : > { %v2770_v12 = vpack.c.bf16 %v1935_v11, %v1934_v10  ;;  %v2193_v10 = vld [vmem:[%s3041_s8 + $0x30] sm:$0xff]  ;;  %v2194_v11 = vld [vmem:[%s3041_s8 + $0x38] sm:$0xff] }
 0x339   : > { %v1423_v14 = vsel %vm1419_vm4, %v1418_v13, -inf }
 0x33a   : > { %1424 = vmax.xlane.f32.xlu0 %v1423_v14  ;;  %v1937_v14 = vld [vmem:[%s3014_s7 + $0x18] sm:$0xff] }
 0x350   : > { %1590 = vrot.lane.b32.xlu0 %v1160_v58, %s2856_s24 }
 0x3c3   : > { %v1422_v15 = vpop.xlane.xlu0 %1421 }
 0x3c4   : > { %v1426_v16 = vsub.f32 %v1417_v7, %v1422_v15 }
 0x3c6   : > { %v1428_v17 = vmul.f32 1.442695, %v1426_v16 }
 0x3c7   : > { %v1425_v18 = vpop.xlane.xlu0 %1424 }
 0x3c8   : > { %2818 = vpow2.f32 %v1428_v17  ;;  %v1427_v19 = vsub.f32 %v1418_v13, %v1425_v18  ;;  %v1936_v13 = vld [vmem:[%s3014_s7 + $0x10] sm:$0xff] }
 0x3c9   : > { %v2774_v15 = vpack.c.bf16 %v1937_v14, %v1936_v13  ;;  %v2562_v13 = vld [vmem:[%s3355_s27] ss:$0 sm:$0xff] }
 0x3ca   : > { %v1430_v20 = vmul.f32 1.442695, %v1427_v19 }
 0x3cb   : > { %v1591_v36 = vpop.permute.xlu0 %1590 }
 0x3cc   : > { %2820 = vpow2.f32 %v1430_v20 }
 0x3d2   : > { %v2819_v21 = vpop.eup %2818 }
 0x3d3   : > { %v1432_v22 = vsel %vm1419_vm4, %v2819_v21, 0.0 }
 0x3d4   : > { %1433 = vadd.xlane.f32.xlu1 %v1432_v22 }
 0x3d6   : > { %v2821_v23 = vpop.eup %2820 }
 0x3d7   : > { %v1435_v24 = vsel %vm1419_vm4, %v2821_v23, 0.0 }
 0x3d8   : > { %1436 = vadd.xlane.f32.xlu1 %v1435_v24  ;;  %v2557_v24 = vld [vmem:[%s3351_s20] ss:$0 sm:$0xff] }
 0x3e9   : > { %1666 = vrot.lane.b32.xlu1 %v1073_v60, %s2856_s24 }
 0x461   : > { %v1434_v32 = vpop.xlane.xlu1 %1433 }
 0x462   : > { %2822 = vrcp.f32 %v1434_v32 }
 0x465   : > { %v1437_v33 = vpop.xlane.xlu1 %1436 }
 0x466   : > { %2824 = vrcp.f32 %v1437_v33 }
 0x469   : > { %v1667_v39 = vpop.permute.xlu1 %1666 }
 0x46c   : > { %v2823_v34 = vpop.eup %2822 }
 0x46d   : > { %v1440_v35 = vmul.f32 %v2823_v34, %v2819_v21 }
 0x46f   : > { %2678 = vmatmul.mubr.msk.f32.vlgmr.msra.gmra.mrb[2].mxu0 %vm1419_vm4, %v1440_v35 }
 0x470   : > { %v2825_v37 = vpop.eup %2824  ;;  %2686 = vmatpush3.xpose.msk.msra.mxu0 %vm1250_vm3, %v1591_v36  ;;  %2687 = vmatprep.mubr.msk.f32.mxu0 %vm2855_vm2, %v2854_v50 }
 0x471   : > { %v1441_v38 = vmul.f32 %v2825_v37, %v2821_v23  ;;  %2695 = vmatprep.subr.mxu0 %v2854_v50 }
 0x473   : > { %2683 = vmatmul.mubr.msk.f32.vlgmr.msra.gmra.mrb[8].mxu1 %vm1419_vm4, %v1441_v38  ;;  %2688 = vmatmul.mubr.msk.f32.vlgmr.msra.gmra.mrb[4].mxu0 %vm1250_vm3, %v1589_v31 }
 0x474   : > { %2691 = vmatpush3.xpose.msk.msra.mxu1 %vm1250_vm3, %v1669_v30  ;;  %2692 = vmatprep.mubr.msk.f32.mxu1 %vm2855_vm2, %v2854_v50 }
 0x475   : > { %2700 = vmatprep.subr.mxu1 %v2854_v50  ;;  %2697 = vmatprep.mubr.msk.f32.mxu0 %vm2855_vm2, %v2854_v50 }
 0x477   : > { %2693 = vmatmul.mubr.msk.f32.vlgmr.msra.gmra.mrb[10].mxu1 %vm1250_vm3, %v1667_v39 }
 0x478   : > { %2702 = vmatprep.mubr.msk.f32.mxu1 %vm2855_vm2, %v2854_v50 }
 0x542   : > { %v3188_v40 = vpop.f32.mrb[2].mxu0 }
 0x543   : > { %v2679_v42 = vpop.f32.mrb[3].mxu0 }
 0x544   : > { %v2075_v42 = vld [vmem:[%s3031_s0] sm:$0xff] }
 0x546   : > { %v3190_v43 = vpop.f32.mrb[8].mxu1  ;;  %v1662_v44 = vpop.f32.mrb[4].mxu0 }
 0x547   : > { %v1744_v45 = vmul.f32 0.25, %v1662_v44  ;;  %v2684_v46 = vpop.f32.mrb[9].mxu1  ;;  %v2689_v47 = vpop.f32.mrb[5].mxu0 }
 0x548   : > { %v2078_v46 = vld [vmem:[%s3031_s0 + $0x18] sm:$0xff] }
 0x549   : > { %v1746_v49 = vadd.f32 %v3150_v4, %v1744_v45  ;;  %v2077_v45 = vld [vmem:[%s3031_s0 + $0x10] sm:$0xff] }
 0x54a   : > { %v1740_v51 = vpop.f32.mrb[10].mxu1  ;;  %v2782_v47 = vpack.c.bf16 %v2078_v46, %v2077_v45 }
 0x54b   : > { %v1745_v52 = vmul.f32 0.25, %v1740_v51  ;;  %v2694_v53 = vpop.f32.mrb[11].mxu1  ;;  %v1748_v54 = vsel %vm1419_vm4, %v1746_v49, -inf }
 0x54c   : > { %1749 = vmax.xlane.f32.xlu0 %v1748_v54 }
 0x54d   : > { %v1747_v55 = vadd.f32 %v3156_v9, %v1745_v52 }
 0x54f   : > { %v1751_v50 = vsel %vm1419_vm4, %v1747_v55, -inf }
 0x550   : > { %1752 = vmax.xlane.f32.xlu1 %v1751_v50 }
 0x561   : > { %1848 = vrot.lane.b32.xlu1 %v1249_v28, %s2856_s24 }
 0x5d9   : > { %v1750_v56 = vpop.xlane.xlu0 %1749 }
 0x5da   : > { %v1754_v57 = vsub.f32 %v1746_v49, %v1750_v56  ;;  %v2558_v56 = vld [vmem:[%s3352_s23] ss:$0 sm:$0xff] }
 0x5dc   : > { %v1756_v58 = vmul.f32 1.442695, %v1754_v57 }
 0x5dd   : > { %v1753_v59 = vpop.xlane.xlu1 %1752 }
 0x5de   : > { %2826 = vpow2.f32 %v1756_v58  ;;  %v1755_v60 = vsub.f32 %v1747_v55, %v1753_v59 }
 0x5e0   : > { %v1758_v61 = vmul.f32 1.442695, %v1755_v60 }
 0x5e1   : > { %v1849_v62 = vpop.permute.xlu1 %1848 }
 0x5e2   : > { %2828 = vpow2.f32 %v1758_v61  ;;  %2701 = vmatpush3.msra.mxu1 %v1849_v62 }
 0x5e8   : > { %v2827_v63 = vpop.eup %2826 }
 0x5e9   : > { %v1760_v0 = vsel %vm1419_vm4, %v2827_v63, 0.0 }
 0x5ea   : > { %1761 = vadd.xlane.f32.xlu0 %v1760_v0 }
 0x5ec   : > { %v2829_v1 = vpop.eup %2828 }
 0x5ed   : > { %v1763_v2 = vsel %vm1419_vm4, %v2829_v1, 0.0 }
 0x5ee   : > { %1764 = vadd.xlane.f32.xlu0 %v1763_v2  ;;  %v2188_v2 = vld [vmem:[%s3041_s8 + $0x8] sm:$0xff] }
 0x604   : > { %1771 = vrot.lane.b32.xlu0 %v1248_v29, %s2856_s24  ;;  %s3353_s24 = sld [smem:[#allocation15_spill]] }
 0x60a   : > { %s3354_s12 = scalar_lea.vmem %s3353_s24, %s2981_s29 }
 0x60b   : > { %v2559_v58 = vld [vmem:[%s3354_s12] ss:$0 sm:$0xff] }
 0x677   : > { %v1762_v3 = vpop.xlane.xlu0 %1761 }
 0x678   : > { %2830 = vrcp.f32 %v1762_v3 }
 0x67b   : > { %v1765_v4 = vpop.xlane.xlu0 %1764 }
 0x67c   : > { %2832 = vrcp.f32 %v1765_v4  ;;  %v2189_v4 = vld [vmem:[%s3041_s8 + $0x10] sm:$0xff] }
 0x67f   : > { %v1772_v5 = vpop.permute.xlu0 %1771 }
 0x680   : > { %2696 = vmatpush3.msra.mxu0 %v1772_v5  ;;  %v2190_v5 = vld [vmem:[%s3041_s8 + $0x18] sm:$0xff] }
 0x681   : > { %2771 = vmatprep.subr.bf16.mxu0 %v2770_v12 }
 0x682   : > { %v2831_v6 = vpop.eup %2830 }
 0x683   : > { %v1768_v7 = vmul.f32 %v2831_v6, %v2827_v63  ;;  %v2790_v6 = vpack.c.bf16 %v2190_v5, %v2189_v4 }
 0x685   : > { %2698 = vmatmul.mubr.msk.f32.vlgmr.msra.gmra.mrb[6].mxu0 %vm1419_vm4, %v1768_v7  ;;  %v2191_v7 = vld [vmem:[%s3041_s8 + $0x20] sm:$0xff] }
 0x686   : > { %v2833_v8 = vpop.eup %2832  ;;  %2773 = vmatpush3.bf16.msra.mxu0 %v2770_v12  ;;  %v2798_v12 = vpack.c.bf16 %v2194_v11, %v2193_v10 }
 0x687   : > { %v1769_v9 = vmul.f32 %v2833_v8, %v2829_v1  ;;  %2775 = vmatprep.subr.bf16.mxu0 %v2774_v15  ;;  %v2187_v1 = vld [vmem:[%s3041_s8] sm:$0xff]  ;;  %v2192_v8 = vld [vmem:[%s3041_s8 + $0x28] sm:$0xff] }
 0x688   : > { %v2786_v3 = vpack.c.bf16 %v2188_v2, %v2187_v1  ;;  %v2567_v1 = vld [vmem:[%s908_s15] ss:$0 sm:$0xff] }
 0x689   : > { %2703 = vmatmul.mubr.msk.f32.vlgmr.msra.gmra.mrb[12].mxu1 %vm1419_vm4, %v1769_v9  ;;  %v2794_v9 = vpack.c.bf16 %v2192_v8, %v2191_v7 }
 0x68a   : > { %2777 = vmatpush3.bf16.msra.mxu0 %v2774_v15 }
 0x68b   : > { %2787 = vmatprep.subr.bf16.mxu0 %v2786_v3 }
 0x758   : > { %v1843_v16 = vpop.f32.mrb[6].mxu0 }
 0x759   : > { %1926 = vrot.lane.b32.xlu1 %v1843_v16, %s2857_s16  ;;  %v2699_v17 = vpop.f32.mrb[7].mxu0 }
 0x75c   : > { %v1920_v18 = vpop.f32.mrb[12].mxu1 }
 0x75d   : > { %1928 = vrot.lane.b32.xlu1 %v1920_v18, %s2857_s16  ;;  %v2704_v19 = vpop.f32.mrb[13].mxu1 }
 0x7cb   : > { %v1927_v20 = vpop.permute.xlu1 %1926 }
 0x7cc   : > { %v1932_v21 = vsel %vm1250_vm3, %v3188_v40, %v1927_v20 }
 0x7cd   : > { %2713 = vmatprep.mubr.msk.f32.mxu0 %vm983_vm1, %v1932_v21 }
 0x7cf   : > { %v1929_v22 = vpop.permute.xlu1 %1928 }
 0x7d0   : > { %v1933_v23 = vsel %vm1250_vm3, %v3190_v43, %v1929_v22  ;;  %v2076_v43 = vld [vmem:[%s3031_s0 + $0x8] sm:$0xff] }
 0x7d1   : > { %2714 = vmatmul.mubr.msk.f32.vlgmr.msra.gmra.mrb[8].mxu0 %vm983_vm1, %v1933_v23  ;;  %v2778_v44 = vpack.c.bf16 %v2076_v43, %v2075_v42 }
 0x7d2   : > { %2789 = vmatpush3.bf16.msra.mxu0 %v2786_v3 }
 0x7d3   : > { %2779 = vmatprep.subr.bf16.mxu1 %v2778_v44  ;;  %2791 = vmatprep.subr.bf16.mxu0 %v2790_v6 }
 0x7d4   : > { %2781 = vmatpush3.bf16.msra.mxu1 %v2778_v44 }
 0x7d5   : > { %2783 = vmatprep.subr.bf16.mxu1 %v2782_v47 }
 0x7d6   : > { %2793 = vmatpush3.bf16.msra.mxu0 %v2790_v6 }
 0x7d7   : > { %2795 = vmatprep.subr.bf16.mxu0 %v2794_v9 }
 0x7d8   : > { %2785 = vmatpush3.bf16.msra.mxu1 %v2782_v47 }
 0x7da   : > { %2797 = vmatpush3.bf16.msra.mxu0 %v2794_v9 }
 0x7db   : > { %2799 = vmatprep.subr.bf16.mxu0 %v2798_v12 }
 0x7de   : > { %2801 = vmatpush3.bf16.msra.mxu0 %v2798_v12 }
 0x8a4   : > { %v2715_v25 = vpop.f32.mrb[8].mxu0 }
 0x8a5   : > { %v2027_v26 = vadd.f32 %v2715_v25, %v2557_v24  ;;  %v2010_v27 = vpop.f32.mrb[9].mxu0 }
 0x8a6   : > { %v2026_v28 = vadd.f32 %v2557_v24, %v2010_v27 }
 0x8a7   : > { %v2029_v29 = vadd.f32 %v2027_v26, %v3105_v48 }
 0x8a8   : > { %v2028_v30 = vadd.f32 %v2026_v28, %v3092_v41 }
 0x8a9   : > { %v2035_v31 = vsel %vm983_vm1, %v2029_v29, 0.0 }
 0x8aa   : > { %2036 = vadd.xlane.f32.xlu1 %v2035_v31  ;;  %v2032_v32 = vsel %vm983_vm1, %v2028_v30, 0.0 }
 0x8ab   : > { %2033 = vadd.xlane.f32.xlu0 %v2032_v32 }
 0x937   : > { %v2037_v33 = vpop.xlane.xlu1 %2036 }
 0x938   : > { %v2040_v34 = vmul.f32 0.03125, %v2037_v33  ;;  %v2034_v35 = vpop.xlane.xlu0 %2033 }
 0x939   : > { %v2039_v36 = vmul.f32 0.03125, %v2034_v35 }
 0x93a   : > { %v2042_v37 = vsub.f32 %v2029_v29, %v2040_v34 }
 0x93b   : > { %v2041_v38 = vsub.f32 %v2028_v30, %v2039_v36  ;;  %v2565_v36 = vld [vmem:[%s3356_s22] ss:$0 sm:$0xff] }
 0x93c   : > { %v2044_v41 = vmul.f32 %v2042_v37, %v2042_v37 }
 0x93d   : > { %v2043_v39 = vmul.f32 %v2041_v38, %v2041_v38 }
 0x93e   : > { %v2048_v40 = vsel %vm983_vm1, %v2044_v41, 0.0 }
 0x93f   : > { %v2045_v48 = vsel %vm983_vm1, %v2043_v39, 0.0 }
 0x940   : > { %2046 = vadd.xlane.f32.xlu0 %v2045_v48 }
 0x944   : > { %2049 = vadd.xlane.f32.xlu0 %v2048_v40 }
 0x9cd   : > { %v2047_v49 = vpop.xlane.xlu0 %2046 }
 0x9ce   : > { %v2051_v51 = vmul.f32 0.03125, %v2047_v49 }
 0x9d0   : > { %v2053_v52 = vadd.f32 1e-12, %v2051_v51 }
 0x9d1   : > { %v2050_v53 = vpop.xlane.xlu0 %2049 }
 0x9d2   : > { %2834 = vrsqrt.f32 %v2053_v52  ;;  %v2052_v54 = vmul.f32 0.03125, %v2050_v53 }
 0x9d4   : > { %v2054_v55 = vadd.f32 1e-12, %v2052_v54 }
 0x9d6   : > { %2836 = vrsqrt.f32 %v2054_v55 }
 0x9dc   : > { %v2835_v50 = vpop.eup %2834 }
 0x9dd   : > { %v2057_v57 = vmul.f32 %v2835_v50, %v2041_v38 }
 0x9df   : > { %v2065_v59 = vmul.f32 %v2558_v56, %v2057_v57 }
 0x9e0   : > { %v2837_v60 = vpop.eup %2836 }
 0x9e1   : > { %v2058_v61 = vmul.f32 %v2837_v60, %v2042_v37  ;;  %v2073_v62 = vadd.f32 %v2559_v58, %v2065_v59 }
 0x9e3   : > { %v2066_v63 = vmul.f32 %v2558_v56, %v2058_v61  ;;  %2724 = vmatprep.mubr.msk.f32.mxu1 %vm983_vm1, %v2073_v62 }
 0x9e5   : > { %v2074_v0 = vadd.f32 %v2559_v58, %v2066_v63 }
 0x9e7   : > { %2725 = vmatmul.mubr.msk.f32.vlgmr.msra.gmra.mrb[14].mxu1 %vm983_vm1, %v2074_v0 }
 0xaba   : > { %v2726_v14 = vpop.f32.mrb[14].mxu1 }
 0xabb   : > { %v2168_v15 = vadd.f32 %v2726_v14, %v2562_v13  ;;  %v2151_v16 = vpop.f32.mrb[15].mxu1 }
 0xabc   : > { %v2167_v17 = vadd.f32 %v2562_v13, %v2151_v16 }
 0xabd   : > { %v2172_v18 = vmul.f32 0.044715, %v2168_v15  ;;  %v2170_v33 = vmul.f32 0.5, %v2168_v15 }
 0xabe   : > { %v2171_v19 = vmul.f32 0.044715, %v2167_v17  ;;  %v2169_v31 = vmul.f32 0.5, %v2167_v17 }
 0xabf   : > { %v2174_v20 = vmul.f32 %v2172_v18, %v2168_v15 }
 0xac0   : > { %v2173_v21 = vmul.f32 %v2171_v19, %v2167_v17 }
 0xac1   : > { %v2176_v22 = vmul.f32 %v2174_v20, %v2168_v15 }
 0xac2   : > { %v2175_v23 = vmul.f32 %v2173_v21, %v2167_v17 }
 0xac3   : > { %v2178_v24 = vadd.f32 %v2176_v22, %v2168_v15 }
 0xac4   : > { %v2177_v25 = vadd.f32 %v2175_v23, %v2167_v17 }
 0xac5   : > { %v2180_v26 = vmul.f32 0.7978846, %v2178_v24 }
 0xac6   : > { %v2179_v27 = vmul.f32 0.7978846, %v2177_v25 }
 0xac7   : > { %2838 = vtanh.f32 %v2180_v26 }
 0xac8   : > { %2840 = vtanh.f32 %v2179_v27 }
 0xad1   : > { %v2839_v28 = vpop.eup %2838 }
 0xad2   : > { %v2841_v29 = vpop.eup %2840  ;;  %v2184_v30 = vadd.f32 1.0, %v2839_v28 }
 0xad3   : > { %v2183_v32 = vadd.f32 1.0, %v2841_v29 }
 0xad4   : > { %v2186_v35 = vmul.f32 %v2184_v30, %v2170_v33 }
 0xad5   : > { %v2185_v34 = vmul.f32 %v2183_v32, %v2169_v31 }
 0xad7   : > { %2743 = vmatprep.mubr.msk.f32.mxu0 %vm2195_vm5, %v2185_v34 }
 0xad8   : > { %2744 = vmatmul.mubr.msk.f32.vlgmr.msra.gmra.mrb[10].mxu0 %vm2195_vm5, %v2186_v35 }
 0xbab   : > { %v2745_v37 = vpop.f32.mrb[10].mxu0 }
 0xbac   : > { %v2285_v38 = vadd.f32 %v2745_v37, %v2565_v36  ;;  %v2268_v39 = vpop.f32.mrb[11].mxu0 }
 0xbad   : > { %v2284_v48 = vadd.f32 %v2565_v36, %v2268_v39 }
 0xbae   : > { %v2287_v41 = vadd.f32 %v2285_v38, %v2074_v0 }
 0xbaf   : > { %v2286_v40 = vadd.f32 %v2284_v48, %v2073_v62  ;;  %v2566_v62 = vld [vmem:[%s905_s4] ss:$0 sm:$0xff] }
 0xbb0   : > { %v2293_v42 = vsel %vm983_vm1, %v2287_v41, 0.0 }
 0xbb1   : > { %2294 = vadd.xlane.f32.xlu1 %v2293_v42  ;;  %v2290_v43 = vsel %vm983_vm1, %v2286_v40, 0.0 }
 0xbb2   : > { %2291 = vadd.xlane.f32.xlu0 %v2290_v43 }
 0xc3e   : > { %v2295_v44 = vpop.xlane.xlu1 %2294 }
 0xc3f   : > { %v2297_v45 = vmul.f32 0.03125, %v2295_v44  ;;  %v2292_v46 = vpop.xlane.xlu0 %2291 }
 0xc40   : > { %v2296_v47 = vmul.f32 0.03125, %v2292_v46 }
 0xc41   : > { %v2299_v49 = vsub.f32 %v2287_v41, %v2297_v45 }
 0xc42   : > { %v2298_v51 = vsub.f32 %v2286_v40, %v2296_v47 }
 0xc43   : > { %v2301_v52 = vmul.f32 %v2299_v49, %v2299_v49 }
 0xc44   : > { %v2300_v53 = vmul.f32 %v2298_v51, %v2298_v51 }
 0xc45   : > { %v2305_v54 = vsel %vm983_vm1, %v2301_v52, 0.0 }
 0xc46   : > { %2306 = vadd.xlane.f32.xlu1 %v2305_v54  ;;  %v2302_v55 = vsel %vm983_vm1, %v2300_v53, 0.0 }
 0xc47   : > { %2303 = vadd.xlane.f32.xlu0 %v2302_v55 }
 0xcd3   : > { %v2307_v50 = vpop.xlane.xlu1 %2306 }
 0xcd4   : > { %v2309_v56 = vmul.f32 0.03125, %v2307_v50  ;;  %v2304_v57 = vpop.xlane.xlu0 %2303 }
 0xcd5   : > { %v2308_v58 = vmul.f32 0.03125, %v2304_v57 }
 0xcd6   : > { %v2311_v59 = vadd.f32 1e-12, %v2309_v56 }
 0xcd7   : > { %v2310_v60 = vadd.f32 1e-12, %v2308_v58 }
 0xcd8   : > { %2842 = vrsqrt.f32 %v2311_v59 }
 0xcd9   : > { %2844 = vrsqrt.f32 %v2310_v60 }
 0xce2   : > { %v2843_v61 = vpop.eup %2842 }
 0xce3   : > { %v2845_v63 = vpop.eup %2844  ;;  %v2315_v0 = vmul.f32 %v2843_v61, %v2299_v49 }
 0xce4   : > { %v2314_v2 = vmul.f32 %v2845_v63, %v2298_v51 }
 0xce5   : > { %v2323_v3 = vmul.f32 %v2566_v62, %v2315_v0 }
 0xce6   : > { %v2322_v4 = vmul.f32 %v2566_v62, %v2314_v2 }
 0xce7   : > { %v2331_v5 = vadd.f32 %v2567_v1, %v2323_v3 }
 0xce8   : > { %v2330_v6 = vadd.f32 %v2567_v1, %v2322_v4 }
 0xce9   : > { %2333 = vst.msk [vmem:[%s3344_s10 + $0x8] sm:$0xff] %vm983_vm1, %v2331_v5 }
 0xcea   : > { %2332 = vst.msk [vmem:[%s3344_s10] sm:$0xff] %vm983_vm1, %v2330_v6 }
 0xceb PF: > { %s3359_s5 = sld [smem:[#allocation2_spill]] }
 0xcf1   : > { %s32_s3 = sadd.s32 1, %s3359_s5  }
 0xcf2   : > { %p29_p5 = scmp.ge.s32.totalorder %s32_s3, 4  }
 0xcf4   :  { %31 = sbr.rel (!%p29_p5) target bundleno = 17 (0x11), region = 183 }

</bundles_post_ra>
